<compile_context>
chip_gen: v6e
topology: v6e:2x2x1
jax: 0.10.0
libtpu: 0.0.40
codegen_flags: <defaults>
</compile_context>

<pallas_src>
import functools

import numpy as np
import jax
import jax.numpy as jnp
from jax.experimental import pallas as pl
from jax.experimental.pallas import tpu as pltpu


# ------------------------- host-side constant matrices ----------------------

def avg_pool_matrix(in_size, k):
    out = in_size // k
    P = np.zeros((out, in_size), np.float32)
    for i in range(out):
        P[i, i * k:(i + 1) * k] = 1.0 / k
    return P


def bilinear_upsample_matrix(out_size, in_size):
    """Row-interpolation matrix matching F.interpolate(mode='bilinear',
    align_corners=False)."""
    scale = in_size / out_size
    U = np.zeros((out_size, in_size), np.float32)
    for i in range(out_size):
        src = max((i + 0.5) * scale - 0.5, 0.0)
        i0 = min(int(np.floor(src)), in_size - 1)
        i1 = min(i0 + 1, in_size - 1)
        l1 = src - i0
        U[i, i0] += 1.0 - l1
        U[i, i1] += l1
    return U


def pool_matrix_flat(H, W, k):
    """(H*W, Hb*Wb): pooled_row = x_row_flat @ M  (k x k average pooling)."""
    P2d = np.kron(avg_pool_matrix(H, k), avg_pool_matrix(W, k))  # (HbWb, HW)
    return np.ascontiguousarray(P2d.T).astype(np.float32)


def upsample_matrix_flat(H, W, k):
    """(Hb*Wb, H*W): up_row = z_row_flat @ M (bilinear, align_corners=False)."""
    U2d = np.kron(bilinear_upsample_matrix(H, H // k),
                  bilinear_upsample_matrix(W, W // k))            # (HW, HbWb)
    return np.ascontiguousarray(U2d.T).astype(np.float32)


def shift_taps_flat(Hb, Wb, ks):
    """(ks*ks, Hb*Wb, Hb*Wb) 0/1 matrices: p_row @ M[a*ks+b] implements
    p[i + a - pad, j + b - pad] with zero padding ('same' depthwise taps)."""
    pad = ks // 2
    taps = []
    for a in range(ks):
        da = a - pad
        A = np.zeros((Hb, Hb), np.float32)
        for i2 in range(Hb):
            i = i2 + da
            if 0 <= i < Hb:
                A[i, i2] = 1.0
        for b in range(ks):
            db = b - pad
            B = np.zeros((Wb, Wb), np.float32)
            for j2 in range(Wb):
                j = j2 + db
                if 0 <= j < Wb:
                    B[j, j2] = 1.0
            taps.append(np.kron(A, B))
    return np.stack(taps).astype(np.float32)


# ----------------------------------- kernel ---------------------------------

def s2module_kernel(x_ref, w1_ref, s0_ref, b0_ref,
                    pm1_ref, sh1_ref, dw1_ref, s11_ref, b11_ref, a1_ref,
                    wpw1_ref, s21_ref, b21_ref, um1_ref,
                    pm2_ref, sh2_ref, dw2_ref, s12_ref, b12_ref, a2_ref,
                    wpw2_ref, s22_ref, b22_ref, um2_ref,
                    wo1_ref, wo2_ref, wo_ref, bo_ref, ao_ref,
                    o_ref, *, n_taps1, n_taps2):
    f32 = jnp.float32
    x = x_ref[0]                                    # (C, H*W) lane-dense slab

    # Stage 1: bottleneck 1x1 conv (channel shuffle folded into w1) + BN + ReLU.
    y = jnp.dot(w1_ref[...], x, preferred_element_type=f32)        # (Cb, HW)
    y = jnp.maximum(y * s0_ref[...] + b0_ref[...], 0.0)

    def s2block(pm_ref, sh_ref, dw_ref, s1_ref, b1_ref, alpha,
                wpw_ref, s2_ref, b2_ref, um_ref, n_taps):
        # AvgPool2d over the flattened plane: one matmul, all channels at once.
        p = jnp.dot(y, pm_ref[...], preferred_element_type=f32)    # (Cb, HbWb)
        # Depthwise kxk 'same' conv: per-tap shift matmul * per-channel weight.
        acc = dw_ref[0] * jnp.dot(p, sh_ref[0], preferred_element_type=f32)
        for t in range(1, n_taps):
            acc = acc + dw_ref[t] * jnp.dot(p, sh_ref[t],
                                            preferred_element_type=f32)
        # BN1 (folded inference affine) + PReLU.
        z = acc * s1_ref[...] + b1_ref[...]
        z = jnp.where(z >= 0.0, z, alpha * z)
        # 1x1 conv across channels (MXU) + BN2.
        z = jnp.dot(wpw_ref[...], z, preferred_element_type=f32)
        z = z * s2_ref[...] + b2_ref[...]
        # Bilinear upsample (align_corners=False): one matmul back to (Cb, HW).
        return jnp.dot(z, um_ref[...], preferred_element_type=f32)

    x1 = s2block(pm1_ref, sh1_ref, dw1_ref, s11_ref, b11_ref, a1_ref[0],
                 wpw1_ref, s21_ref, b21_ref, um1_ref, n_taps1)
    x2 = s2block(pm2_ref, sh2_ref, dw2_ref, s12_ref, b12_ref, a2_ref[0],
                 wpw2_ref, s22_ref, b22_ref, um2_ref, n_taps2)

    # concat([x1, x2], dim=C) + residual, final 1x1 conv (bias) + PReLU:
    #   wo @ (cat(x1, x2) + x) == wo[:, :Cb] @ x1 + wo[:, Cb:] @ x2 + wo @ x
    out = (jnp.dot(wo1_ref[...], x1, preferred_element_type=f32)
           + jnp.dot(wo2_ref[...], x2, preferred_element_type=f32)
           + jnp.dot(wo_ref[...], x, preferred_element_type=f32)
           + bo_ref[...])
    o_ref[0] = jnp.where(out >= 0.0, out, ao_ref[0] * out)


# ------------------------------- parameters ---------------------------------

def init_params(key, C, Cout, ks1, ks2):
    Cb = C // 2 if C // 2 != 0 else 1
    keys = iter(jax.random.split(key, 32))

    def conv_w(shape, scale=0.3):
        return scale * jax.random.normal(next(keys), shape, jnp.float32)

    def bn(c):  # deterministic gamma/beta/running stats, folded to scale/bias
        gamma = 1.0 + 0.1 * jax.random.normal(next(keys), (c,), jnp.float32)
        beta = 0.1 * jax.random.normal(next(keys), (c,), jnp.float32)
        mean = 0.1 * jax.random.normal(next(keys), (c,), jnp.float32)
        var = jax.random.uniform(next(keys), (c,), jnp.float32, 0.5, 1.5)
        s = gamma / jnp.sqrt(var + 1e-5)
        return s, beta - mean * s

    bn0_s, bn0_b = bn(Cb)

    def block(ks):
        dw = conv_w((Cb, ks, ks))
        s1, b1 = bn(Cb)
        wpw = conv_w((Cb, Cb))
        s2, b2 = bn(Cb)
        return dict(dw=dw, bn1_s=s1, bn1_b=b1,
                    alpha=jnp.array([0.25], jnp.float32),  # nn.PReLU() default
                    wpw=wpw, bn2_s=s2, bn2_b=b2, ks=ks)

    return dict(
        Cb=Cb,
        w_pw1=conv_w((Cb, C)), bn0_s=bn0_s, bn0_b=bn0_b,
        b1=block(ks1), b2=block(ks2),
        w_out=conv_w((Cout, C)),
        b_out=0.1 * jax.random.normal(next(keys), (Cout,), jnp.float32),
        alpha_out=jnp.array([0.25], jnp.float32),
    )


# ------------------------------- forward wrapper ----------------------------

def s2module_forward(x, params, k1, k2):
    N, C, H, W = x.shape
    Cb = params['Cb']
    Cout = params['w_out'].shape[0]
    b1p, b2p = params['b1'], params['b2']
    ks1, ks2 = b1p['ks'], b2p['ks']
    HW = H * W

    # Lane-dense activation layout: one (C, H*W) slab per batch element.
    x3d = x.reshape(N, C, HW)

    # Fold the fixed channel shuffle into the bottleneck weight columns:
    #   w_pw1 @ x[perm] == w_pw1[:, argsort(perm)] @ x
    w1 = params['w_pw1'][:, jnp.argsort(params['perm'])]

    # Host-built constant matrices (data/weight independent).
    pm1 = jnp.asarray(pool_matrix_flat(H, W, k1))
    um1 = jnp.asarray(upsample_matrix_flat(H, W, k1))
    sh1 = jnp.asarray(shift_taps_flat(H // k1, W // k1, ks1))
    pm2 = jnp.asarray(pool_matrix_flat(H, W, k2))
    um2 = jnp.asarray(upsample_matrix_flat(H, W, k2))
    sh2 = jnp.asarray(shift_taps_flat(H // k2, W // k2, ks2))

    col = lambda v: v.reshape(-1, 1)                       # per-channel column
    dwc = lambda bp, ks: bp['dw'].reshape(Cb, ks * ks).T.reshape(ks * ks, Cb, 1)

    inputs = (
        x3d, w1, col(params['bn0_s']), col(params['bn0_b']),
        pm1, sh1, dwc(b1p, ks1), col(b1p['bn1_s']), col(b1p['bn1_b']),
        b1p['alpha'], b1p['wpw'], col(b1p['bn2_s']), col(b1p['bn2_b']), um1,
        pm2, sh2, dwc(b2p, ks2), col(b2p['bn1_s']), col(b2p['bn1_b']),
        b2p['alpha'], b2p['wpw'], col(b2p['bn2_s']), col(b2p['bn2_b']), um2,
        params['w_out'][:, :Cb], params['w_out'][:, Cb:], params['w_out'],
        col(params['b_out']), params['alpha_out'],
    )

    vmem = pl.BlockSpec(memory_space=pltpu.MemorySpace.VMEM)
    smem = pl.BlockSpec(memory_space=pltpu.MemorySpace.SMEM)
    in_specs = [
        pl.BlockSpec((1, C, HW), lambda n: (n, 0, 0)),   # x: one batch / step
        vmem, vmem, vmem,
        vmem, vmem, vmem, vmem, vmem, smem, vmem, vmem, vmem, vmem,   # block 1
        vmem, vmem, vmem, vmem, vmem, smem, vmem, vmem, vmem, vmem,   # block 2
        vmem, vmem, vmem, vmem, smem,                                 # final
    ]
    kernel = functools.partial(s2module_kernel,
                               n_taps1=ks1 * ks1, n_taps2=ks2 * ks2)
    out3d = pl.pallas_call(
        kernel,
        grid=(N,),
        out_shape=jax.ShapeDtypeStruct((N, Cout, HW), jnp.float32),
        in_specs=in_specs,
        out_specs=pl.BlockSpec((1, Cout, HW), lambda n: (n, 0, 0)),
        compiler_params=pltpu.CompilerParams(
            dimension_semantics=("parallel",)),   # v7x: one batch elem per TC
    )(*inputs)
    return out3d.reshape(N, Cout, H, W)


# ------------------------------ plain-JAX reference -------------------------

def ref_forward(x, params, k1, k2):
    def affine(y, s, b):
        return y * s[None, :, None, None] + b[None, :, None, None]

    xs = x[:, params['perm']]
    y = jnp.einsum('oc,nchw->nohw', params['w_pw1'], xs)
    y = jnp.maximum(affine(y, params['bn0_s'], params['bn0_b']), 0.0)

    def block(y, bp, k):
        ks = bp['ks']
        N, C_, H, W = y.shape
        Hb, Wb = H // k, W // k
        p = y.reshape(N, C_, Hb, k, Wb, k).mean(axis=(3, 5))
        z = jax.lax.conv_general_dilated(
            p, bp['dw'].reshape(C_, 1, ks, ks), (1, 1),
            [(ks // 2, ks // 2)] * 2,
            dimension_numbers=('NCHW', 'OIHW', 'NCHW'), feature_group_count=C_)
        z = affine(z, bp['bn1_s'], bp['bn1_b'])
        z = jnp.where(z >= 0, z, bp['alpha'][0] * z)
        z = jnp.einsum('oc,nchw->nohw', bp['wpw'], z)
        z = affine(z, bp['bn2_s'], bp['bn2_b'])
        uh = jnp.asarray(bilinear_upsample_matrix(H, Hb))
        uw = jnp.asarray(bilinear_upsample_matrix(W, Wb))
        return jnp.einsum('Ha,ncab,Wb->ncHW', uh, z, uw)

    x1 = block(y, params['b1'], k1)
    x2 = block(y, params['b2'], k2)
    xc = jnp.concatenate([x1, x2], axis=1) + x
    out = (jnp.einsum('oc,nchw->nohw', params['w_out'], xc)
           + params['b_out'][None, :, None, None])
    return jnp.where(out >= 0, out, params['alpha_out'][0] * out)


# ----------------------------------- main ------------------------------------

if __name__ == "__main__":
    key = jax.random.PRNGKey(0)
    kx, kp, kperm = jax.random.split(key, 3)

    N, C, H, W = 2, 4, 16, 16
    Cout = 4
    block_1_args = dict(avg_pool_kernel=2, kernel_size=3)
    block_2_args = dict(avg_pool_kernel=4, kernel_size=5)

    x = jax.random.normal(kx, (N, C, H, W), jnp.float32)
    params = init_params(kp, C, Cout,
                         block_1_args['kernel_size'], block_2_args['kernel_size'])
    # TODO(synk): torch.randperm re-shuffles channels on every forward and
    # train-mode BatchNorm uses batch stats; a fixed deterministic permutation
    # (folded into the bottleneck weights) and inference-mode folded BatchNorm
    # are used here. Full SINetEncoder wiring needs config/SegModel20.json.
    params['perm'] = jax.random.permutation(kperm, C)

    out = jax.block_until_ready(
        s2module_forward(x, params,
                         block_1_args['avg_pool_kernel'],
                         block_2_args['avg_pool_kernel']))

    ref = jax.block_until_ready(
        ref_forward(x, params,
                    block_1_args['avg_pool_kernel'],
                    block_2_args['avg_pool_kernel']))

    np.testing.assert_allclose(np.asarray(out), np.asarray(ref),
                               rtol=2e-2, atol=2e-2)
    print("KERNEL_OK")
</pallas_src>

<mosaic_0001>
module attributes {stable_mosaic.version = 11 : i64} {
  func.func @s2module_kernel(%arg0: i32, %arg1: memref<1x4x256xf32, #tpu.memory_space<vmem>>, %arg2: memref<2x4xf32, #tpu.memory_space<vmem>>, %arg3: memref<2x1xf32, #tpu.memory_space<vmem>>, %arg4: memref<2x1xf32, #tpu.memory_space<vmem>>, %arg5: memref<256x64xf32, #tpu.memory_space<vmem>>, %arg6: memref<9x64x64xf32, #tpu.memory_space<vmem>>, %arg7: memref<9x2x1xf32, #tpu.memory_space<vmem>>, %arg8: memref<2x1xf32, #tpu.memory_space<vmem>>, %arg9: memref<2x1xf32, #tpu.memory_space<vmem>>, %arg10: memref<1xf32, #tpu.memory_space<smem>>, %arg11: memref<2x2xf32, #tpu.memory_space<vmem>>, %arg12: memref<2x1xf32, #tpu.memory_space<vmem>>, %arg13: memref<2x1xf32, #tpu.memory_space<vmem>>, %arg14: memref<64x256xf32, #tpu.memory_space<vmem>>, %arg15: memref<256x16xf32, #tpu.memory_space<vmem>>, %arg16: memref<25x16x16xf32, #tpu.memory_space<vmem>>, %arg17: memref<25x2x1xf32, #tpu.memory_space<vmem>>, %arg18: memref<2x1xf32, #tpu.memory_space<vmem>>, %arg19: memref<2x1xf32, #tpu.memory_space<vmem>>, %arg20: memref<1xf32, #tpu.memory_space<smem>>, %arg21: memref<2x2xf32, #tpu.memory_space<vmem>>, %arg22: memref<2x1xf32, #tpu.memory_space<vmem>>, %arg23: memref<2x1xf32, #tpu.memory_space<vmem>>, %arg24: memref<16x256xf32, #tpu.memory_space<vmem>>, %arg25: memref<4x2xf32, #tpu.memory_space<vmem>>, %arg26: memref<4x2xf32, #tpu.memory_space<vmem>>, %arg27: memref<4x4xf32, #tpu.memory_space<vmem>>, %arg28: memref<4x1xf32, #tpu.memory_space<vmem>>, %arg29: memref<1xf32, #tpu.memory_space<smem>>, %arg30: memref<1x4x256xf32, #tpu.memory_space<vmem>>) attributes {dimension_semantics = [#tpu.dimension_semantics<parallel>], iteration_bounds = array<i64: 2>, scalar_prefetch = 0 : i64, scratch_operands = 0 : i64, tpu.core_type = #tpu.core_type<tc>, window_params = [{transform_indices = @transform_0, window_bounds = array<i64: 1, 4, 256>}, {pipeline_mode = #tpu.pipeline_mode<synchronous>, transform_indices = @transform_1, window_bounds = array<i64: 2, 4>}, {pipeline_mode = #tpu.pipeline_mode<synchronous>, transform_indices = @transform_2, window_bounds = array<i64: 2, 1>}, {pipeline_mode = #tpu.pipeline_mode<synchronous>, transform_indices = @transform_3, window_bounds = array<i64: 2, 1>}, {pipeline_mode = #tpu.pipeline_mode<synchronous>, transform_indices = @transform_4, window_bounds = array<i64: 256, 64>}, {pipeline_mode = #tpu.pipeline_mode<synchronous>, transform_indices = @transform_5, window_bounds = array<i64: 9, 64, 64>}, {pipeline_mode = #tpu.pipeline_mode<synchronous>, transform_indices = @transform_6, window_bounds = array<i64: 9, 2, 1>}, {pipeline_mode = #tpu.pipeline_mode<synchronous>, transform_indices = @transform_7, window_bounds = array<i64: 2, 1>}, {pipeline_mode = #tpu.pipeline_mode<synchronous>, transform_indices = @transform_8, window_bounds = array<i64: 2, 1>}, {transform_indices = @transform_9, window_bounds = array<i64: 1>}, {pipeline_mode = #tpu.pipeline_mode<synchronous>, transform_indices = @transform_10, window_bounds = array<i64: 2, 2>}, {pipeline_mode = #tpu.pipeline_mode<synchronous>, transform_indices = @transform_11, window_bounds = array<i64: 2, 1>}, {pipeline_mode = #tpu.pipeline_mode<synchronous>, transform_indices = @transform_12, window_bounds = array<i64: 2, 1>}, {pipeline_mode = #tpu.pipeline_mode<synchronous>, transform_indices = @transform_13, window_bounds = array<i64: 64, 256>}, {pipeline_mode = #tpu.pipeline_mode<synchronous>, transform_indices = @transform_14, window_bounds = array<i64: 256, 16>}, {pipeline_mode = #tpu.pipeline_mode<synchronous>, transform_indices = @transform_15, window_bounds = array<i64: 25, 16, 16>}, {pipeline_mode = #tpu.pipeline_mode<synchronous>, transform_indices = @transform_16, window_bounds = array<i64: 25, 2, 1>}, {pipeline_mode = #tpu.pipeline_mode<synchronous>, transform_indices = @transform_17, window_bounds = array<i64: 2, 1>}, {pipeline_mode = #tpu.pipeline_mode<synchronous>, transform_indices = @transform_18, window_bounds = array<i64: 2, 1>}, {transform_indices = @transform_19, window_bounds = array<i64: 1>}, {pipeline_mode = #tpu.pipeline_mode<synchronous>, transform_indices = @transform_20, window_bounds = array<i64: 2, 2>}, {pipeline_mode = #tpu.pipeline_mode<synchronous>, transform_indices = @transform_21, window_bounds = array<i64: 2, 1>}, {pipeline_mode = #tpu.pipeline_mode<synchronous>, transform_indices = @transform_22, window_bounds = array<i64: 2, 1>}, {pipeline_mode = #tpu.pipeline_mode<synchronous>, transform_indices = @transform_23, window_bounds = array<i64: 16, 256>}, {pipeline_mode = #tpu.pipeline_mode<synchronous>, transform_indices = @transform_24, window_bounds = array<i64: 4, 2>}, {pipeline_mode = #tpu.pipeline_mode<synchronous>, transform_indices = @transform_25, window_bounds = array<i64: 4, 2>}, {pipeline_mode = #tpu.pipeline_mode<synchronous>, transform_indices = @transform_26, window_bounds = array<i64: 4, 4>}, {pipeline_mode = #tpu.pipeline_mode<synchronous>, transform_indices = @transform_27, window_bounds = array<i64: 4, 1>}, {transform_indices = @transform_28, window_bounds = array<i64: 1>}, {transform_indices = @transform_29, window_bounds = array<i64: 1, 4, 256>}]} {
    %c0 = arith.constant 0 : index
    %c0_0 = arith.constant 0 : index
    %c0_1 = arith.constant 0 : index
    %0 = vector.load %arg1[%c0, %c0_0, %c0_1] : memref<1x4x256xf32, #tpu.memory_space<vmem>>, vector<1x4x256xf32>
    %1 = vector.shape_cast %0 : vector<1x4x256xf32> to vector<4x256xf32>
    %c0_2 = arith.constant 0 : index
    %c0_3 = arith.constant 0 : index
    %2 = vector.load %arg2[%c0_2, %c0_3] : memref<2x4xf32, #tpu.memory_space<vmem>>, vector<2x4xf32>
    %cst = arith.constant dense<0.000000e+00> : vector<2x256xf32>
    %3 = tpu.matmul %2, %1, %cst {dimension_numbers = #tpu.dot_dimension_numbers<[1], [0], [0], [1], [0, 0, 1, 1], [], []>} : vector<2x4xf32>, vector<4x256xf32>, vector<2x256xf32> -> vector<2x256xf32>
    %c0_4 = arith.constant 0 : index
    %c0_5 = arith.constant 0 : index
    %4 = vector.load %arg3[%c0_4, %c0_5] : memref<2x1xf32, #tpu.memory_space<vmem>>, vector<2x1xf32>
    %5 = vector.broadcast %4 : vector<2x1xf32> to vector<2x256xf32>
    %6 = arith.mulf %3, %5 : vector<2x256xf32>
    %c0_6 = arith.constant 0 : index
    %c0_7 = arith.constant 0 : index
    %7 = vector.load %arg4[%c0_6, %c0_7] : memref<2x1xf32, #tpu.memory_space<vmem>>, vector<2x1xf32>
    %8 = vector.broadcast %7 : vector<2x1xf32> to vector<2x256xf32>
    %9 = arith.addf %6, %8 : vector<2x256xf32>
    %cst_8 = arith.constant 0.000000e+00 : f32
    %10 = vector.broadcast %cst_8 : f32 to vector<2x256xf32>
    %11 = arith.maximumf %9, %10 : vector<2x256xf32>
    %c0_9 = arith.constant 0 : index
    %12 = memref.load %arg10[%c0_9] : memref<1xf32, #tpu.memory_space<smem>>
    %c0_10 = arith.constant 0 : index
    %c0_11 = arith.constant 0 : index
    %13 = vector.load %arg5[%c0_10, %c0_11] : memref<256x64xf32, #tpu.memory_space<vmem>>, vector<256x64xf32>
    %cst_12 = arith.constant dense<0.000000e+00> : vector<2x64xf32>
    %14 = tpu.matmul %11, %13, %cst_12 {dimension_numbers = #tpu.dot_dimension_numbers<[1], [0], [0], [1], [0, 0, 1, 1], [], []>} : vector<2x256xf32>, vector<256x64xf32>, vector<2x64xf32> -> vector<2x64xf32>
    %c0_13 = arith.constant 0 : index
    %c0_14 = arith.constant 0 : index
    %c0_15 = arith.constant 0 : index
    %15 = vector.load %arg7[%c0_13, %c0_14, %c0_15] : memref<9x2x1xf32, #tpu.memory_space<vmem>>, vector<1x2x1xf32>
    %16 = vector.shape_cast %15 : vector<1x2x1xf32> to vector<2x1xf32>
    %c0_16 = arith.constant 0 : index
    %c0_17 = arith.constant 0 : index
    %c0_18 = arith.constant 0 : index
    %17 = vector.load %arg6[%c0_16, %c0_17, %c0_18] : memref<9x64x64xf32, #tpu.memory_space<vmem>>, vector<1x64x64xf32>
    %18 = vector.shape_cast %17 : vector<1x64x64xf32> to vector<64x64xf32>
    %cst_19 = arith.constant dense<0.000000e+00> : vector<2x64xf32>
    %19 = tpu.matmul %14, %18, %cst_19 {dimension_numbers = #tpu.dot_dimension_numbers<[1], [0], [0], [1], [0, 0, 1, 1], [], []>} : vector<2x64xf32>, vector<64x64xf32>, vector<2x64xf32> -> vector<2x64xf32>
    %20 = vector.broadcast %16 : vector<2x1xf32> to vector<2x64xf32>
    %21 = arith.mulf %20, %19 : vector<2x64xf32>
    %c1 = arith.constant 1 : index
    %c0_20 = arith.constant 0 : index
    %c0_21 = arith.constant 0 : index
    %22 = vector.load %arg7[%c1, %c0_20, %c0_21] : memref<9x2x1xf32, #tpu.memory_space<vmem>>, vector<1x2x1xf32>
    %23 = vector.shape_cast %22 : vector<1x2x1xf32> to vector<2x1xf32>
    %c1_22 = arith.constant 1 : index
    %c0_23 = arith.constant 0 : index
    %c0_24 = arith.constant 0 : index
    %24 = vector.load %arg6[%c1_22, %c0_23, %c0_24] : memref<9x64x64xf32, #tpu.memory_space<vmem>>, vector<1x64x64xf32>
    %25 = vector.shape_cast %24 : vector<1x64x64xf32> to vector<64x64xf32>
    %cst_25 = arith.constant dense<0.000000e+00> : vector<2x64xf32>
    %26 = tpu.matmul %14, %25, %cst_25 {dimension_numbers = #tpu.dot_dimension_numbers<[1], [0], [0], [1], [0, 0, 1, 1], [], []>} : vector<2x64xf32>, vector<64x64xf32>, vector<2x64xf32> -> vector<2x64xf32>
    %27 = vector.broadcast %23 : vector<2x1xf32> to vector<2x64xf32>
    %28 = arith.mulf %27, %26 : vector<2x64xf32>
    %29 = arith.addf %21, %28 : vector<2x64xf32>
    %c2 = arith.constant 2 : index
    %c0_26 = arith.constant 0 : index
    %c0_27 = arith.constant 0 : index
    %30 = vector.load %arg7[%c2, %c0_26, %c0_27] : memref<9x2x1xf32, #tpu.memory_space<vmem>>, vector<1x2x1xf32>
    %31 = vector.shape_cast %30 : vector<1x2x1xf32> to vector<2x1xf32>
    %c2_28 = arith.constant 2 : index
    %c0_29 = arith.constant 0 : index
    %c0_30 = arith.constant 0 : index
    %32 = vector.load %arg6[%c2_28, %c0_29, %c0_30] : memref<9x64x64xf32, #tpu.memory_space<vmem>>, vector<1x64x64xf32>
    %33 = vector.shape_cast %32 : vector<1x64x64xf32> to vector<64x64xf32>
    %cst_31 = arith.constant dense<0.000000e+00> : vector<2x64xf32>
    %34 = tpu.matmul %14, %33, %cst_31 {dimension_numbers = #tpu.dot_dimension_numbers<[1], [0], [0], [1], [0, 0, 1, 1], [], []>} : vector<2x64xf32>, vector<64x64xf32>, vector<2x64xf32> -> vector<2x64xf32>
    %35 = vector.broadcast %31 : vector<2x1xf32> to vector<2x64xf32>
    %36 = arith.mulf %35, %34 : vector<2x64xf32>
    %37 = arith.addf %29, %36 : vector<2x64xf32>
    %c3 = arith.constant 3 : index
    %c0_32 = arith.constant 0 : index
    %c0_33 = arith.constant 0 : index
    %38 = vector.load %arg7[%c3, %c0_32, %c0_33] : memref<9x2x1xf32, #tpu.memory_space<vmem>>, vector<1x2x1xf32>
    %39 = vector.shape_cast %38 : vector<1x2x1xf32> to vector<2x1xf32>
    %c3_34 = arith.constant 3 : index
    %c0_35 = arith.constant 0 : index
    %c0_36 = arith.constant 0 : index
    %40 = vector.load %arg6[%c3_34, %c0_35, %c0_36] : memref<9x64x64xf32, #tpu.memory_space<vmem>>, vector<1x64x64xf32>
    %41 = vector.shape_cast %40 : vector<1x64x64xf32> to vector<64x64xf32>
    %cst_37 = arith.constant dense<0.000000e+00> : vector<2x64xf32>
    %42 = tpu.matmul %14, %41, %cst_37 {dimension_numbers = #tpu.dot_dimension_numbers<[1], [0], [0], [1], [0, 0, 1, 1], [], []>} : vector<2x64xf32>, vector<64x64xf32>, vector<2x64xf32> -> vector<2x64xf32>
    %43 = vector.broadcast %39 : vector<2x1xf32> to vector<2x64xf32>
    %44 = arith.mulf %43, %42 : vector<2x64xf32>
    %45 = arith.addf %37, %44 : vector<2x64xf32>
    %c4 = arith.constant 4 : index
    %c0_38 = arith.constant 0 : index
    %c0_39 = arith.constant 0 : index
    %46 = vector.load %arg7[%c4, %c0_38, %c0_39] : memref<9x2x1xf32, #tpu.memory_space<vmem>>, vector<1x2x1xf32>
    %47 = vector.shape_cast %46 : vector<1x2x1xf32> to vector<2x1xf32>
    %c4_40 = arith.constant 4 : index
    %c0_41 = arith.constant 0 : index
    %c0_42 = arith.constant 0 : index
    %48 = vector.load %arg6[%c4_40, %c0_41, %c0_42] : memref<9x64x64xf32, #tpu.memory_space<vmem>>, vector<1x64x64xf32>
    %49 = vector.shape_cast %48 : vector<1x64x64xf32> to vector<64x64xf32>
    %cst_43 = arith.constant dense<0.000000e+00> : vector<2x64xf32>
    %50 = tpu.matmul %14, %49, %cst_43 {dimension_numbers = #tpu.dot_dimension_numbers<[1], [0], [0], [1], [0, 0, 1, 1], [], []>} : vector<2x64xf32>, vector<64x64xf32>, vector<2x64xf32> -> vector<2x64xf32>
    %51 = vector.broadcast %47 : vector<2x1xf32> to vector<2x64xf32>
    %52 = arith.mulf %51, %50 : vector<2x64xf32>
    %53 = arith.addf %45, %52 : vector<2x64xf32>
    %c5 = arith.constant 5 : index
    %c0_44 = arith.constant 0 : index
    %c0_45 = arith.constant 0 : index
    %54 = vector.load %arg7[%c5, %c0_44, %c0_45] : memref<9x2x1xf32, #tpu.memory_space<vmem>>, vector<1x2x1xf32>
    %55 = vector.shape_cast %54 : vector<1x2x1xf32> to vector<2x1xf32>
    %c5_46 = arith.constant 5 : index
    %c0_47 = arith.constant 0 : index
    %c0_48 = arith.constant 0 : index
    %56 = vector.load %arg6[%c5_46, %c0_47, %c0_48] : memref<9x64x64xf32, #tpu.memory_space<vmem>>, vector<1x64x64xf32>
    %57 = vector.shape_cast %56 : vector<1x64x64xf32> to vector<64x64xf32>
    %cst_49 = arith.constant dense<0.000000e+00> : vector<2x64xf32>
    %58 = tpu.matmul %14, %57, %cst_49 {dimension_numbers = #tpu.dot_dimension_numbers<[1], [0], [0], [1], [0, 0, 1, 1], [], []>} : vector<2x64xf32>, vector<64x64xf32>, vector<2x64xf32> -> vector<2x64xf32>
    %59 = vector.broadcast %55 : vector<2x1xf32> to vector<2x64xf32>
    %60 = arith.mulf %59, %58 : vector<2x64xf32>
    %61 = arith.addf %53, %60 : vector<2x64xf32>
    %c6 = arith.constant 6 : index
    %c0_50 = arith.constant 0 : index
    %c0_51 = arith.constant 0 : index
    %62 = vector.load %arg7[%c6, %c0_50, %c0_51] : memref<9x2x1xf32, #tpu.memory_space<vmem>>, vector<1x2x1xf32>
    %63 = vector.shape_cast %62 : vector<1x2x1xf32> to vector<2x1xf32>
    %c6_52 = arith.constant 6 : index
    %c0_53 = arith.constant 0 : index
    %c0_54 = arith.constant 0 : index
    %64 = vector.load %arg6[%c6_52, %c0_53, %c0_54] : memref<9x64x64xf32, #tpu.memory_space<vmem>>, vector<1x64x64xf32>
    %65 = vector.shape_cast %64 : vector<1x64x64xf32> to vector<64x64xf32>
    %cst_55 = arith.constant dense<0.000000e+00> : vector<2x64xf32>
    %66 = tpu.matmul %14, %65, %cst_55 {dimension_numbers = #tpu.dot_dimension_numbers<[1], [0], [0], [1], [0, 0, 1, 1], [], []>} : vector<2x64xf32>, vector<64x64xf32>, vector<2x64xf32> -> vector<2x64xf32>
    %67 = vector.broadcast %63 : vector<2x1xf32> to vector<2x64xf32>
    %68 = arith.mulf %67, %66 : vector<2x64xf32>
    %69 = arith.addf %61, %68 : vector<2x64xf32>
    %c7 = arith.constant 7 : index
    %c0_56 = arith.constant 0 : index
    %c0_57 = arith.constant 0 : index
    %70 = vector.load %arg7[%c7, %c0_56, %c0_57] : memref<9x2x1xf32, #tpu.memory_space<vmem>>, vector<1x2x1xf32>
    %71 = vector.shape_cast %70 : vector<1x2x1xf32> to vector<2x1xf32>
    %c7_58 = arith.constant 7 : index
    %c0_59 = arith.constant 0 : index
    %c0_60 = arith.constant 0 : index
    %72 = vector.load %arg6[%c7_58, %c0_59, %c0_60] : memref<9x64x64xf32, #tpu.memory_space<vmem>>, vector<1x64x64xf32>
    %73 = vector.shape_cast %72 : vector<1x64x64xf32> to vector<64x64xf32>
    %cst_61 = arith.constant dense<0.000000e+00> : vector<2x64xf32>
    %74 = tpu.matmul %14, %73, %cst_61 {dimension_numbers = #tpu.dot_dimension_numbers<[1], [0], [0], [1], [0, 0, 1, 1], [], []>} : vector<2x64xf32>, vector<64x64xf32>, vector<2x64xf32> -> vector<2x64xf32>
    %75 = vector.broadcast %71 : vector<2x1xf32> to vector<2x64xf32>
    %76 = arith.mulf %75, %74 : vector<2x64xf32>
    %77 = arith.addf %69, %76 : vector<2x64xf32>
    %c8 = arith.constant 8 : index
    %c0_62 = arith.constant 0 : index
    %c0_63 = arith.constant 0 : index
    %78 = vector.load %arg7[%c8, %c0_62, %c0_63] : memref<9x2x1xf32, #tpu.memory_space<vmem>>, vector<1x2x1xf32>
    %79 = vector.shape_cast %78 : vector<1x2x1xf32> to vector<2x1xf32>
    %c8_64 = arith.constant 8 : index
    %c0_65 = arith.constant 0 : index
    %c0_66 = arith.constant 0 : index
    %80 = vector.load %arg6[%c8_64, %c0_65, %c0_66] : memref<9x64x64xf32, #tpu.memory_space<vmem>>, vector<1x64x64xf32>
    %81 = vector.shape_cast %80 : vector<1x64x64xf32> to vector<64x64xf32>
    %cst_67 = arith.constant dense<0.000000e+00> : vector<2x64xf32>
    %82 = tpu.matmul %14, %81, %cst_67 {dimension_numbers = #tpu.dot_dimension_numbers<[1], [0], [0], [1], [0, 0, 1, 1], [], []>} : vector<2x64xf32>, vector<64x64xf32>, vector<2x64xf32> -> vector<2x64xf32>
    %83 = vector.broadcast %79 : vector<2x1xf32> to vector<2x64xf32>
    %84 = arith.mulf %83, %82 : vector<2x64xf32>
    %85 = arith.addf %77, %84 : vector<2x64xf32>
    %c0_68 = arith.constant 0 : index
    %c0_69 = arith.constant 0 : index
    %86 = vector.load %arg8[%c0_68, %c0_69] : memref<2x1xf32, #tpu.memory_space<vmem>>, vector<2x1xf32>
    %87 = vector.broadcast %86 : vector<2x1xf32> to vector<2x64xf32>
    %88 = arith.mulf %85, %87 : vector<2x64xf32>
    %c0_70 = arith.constant 0 : index
    %c0_71 = arith.constant 0 : index
    %89 = vector.load %arg9[%c0_70, %c0_71] : memref<2x1xf32, #tpu.memory_space<vmem>>, vector<2x1xf32>
    %90 = vector.broadcast %89 : vector<2x1xf32> to vector<2x64xf32>
    %91 = arith.addf %88, %90 : vector<2x64xf32>
    %cst_72 = arith.constant 0.000000e+00 : f32
    %92 = vector.broadcast %cst_72 : f32 to vector<2x64xf32>
    %93 = arith.cmpf oge, %91, %92 : vector<2x64xf32>
    %94 = vector.broadcast %12 : f32 to vector<2x64xf32>
    %95 = arith.mulf %94, %91 : vector<2x64xf32>
    %96 = arith.select %93, %91, %95 : vector<2x64xi1>, vector<2x64xf32>
    %c0_73 = arith.constant 0 : index
    %c0_74 = arith.constant 0 : index
    %97 = vector.load %arg11[%c0_73, %c0_74] : memref<2x2xf32, #tpu.memory_space<vmem>>, vector<2x2xf32>
    %cst_75 = arith.constant dense<0.000000e+00> : vector<2x64xf32>
    %98 = tpu.matmul %97, %96, %cst_75 {dimension_numbers = #tpu.dot_dimension_numbers<[1], [0], [0], [1], [0, 0, 1, 1], [], []>} : vector<2x2xf32>, vector<2x64xf32>, vector<2x64xf32> -> vector<2x64xf32>
    %c0_76 = arith.constant 0 : index
    %c0_77 = arith.constant 0 : index
    %99 = vector.load %arg12[%c0_76, %c0_77] : memref<2x1xf32, #tpu.memory_space<vmem>>, vector<2x1xf32>
    %100 = vector.broadcast %99 : vector<2x1xf32> to vector<2x64xf32>
    %101 = arith.mulf %98, %100 : vector<2x64xf32>
    %c0_78 = arith.constant 0 : index
    %c0_79 = arith.constant 0 : index
    %102 = vector.load %arg13[%c0_78, %c0_79] : memref<2x1xf32, #tpu.memory_space<vmem>>, vector<2x1xf32>
    %103 = vector.broadcast %102 : vector<2x1xf32> to vector<2x64xf32>
    %104 = arith.addf %101, %103 : vector<2x64xf32>
    %c0_80 = arith.constant 0 : index
    %c0_81 = arith.constant 0 : index
    %105 = vector.load %arg14[%c0_80, %c0_81] : memref<64x256xf32, #tpu.memory_space<vmem>>, vector<64x256xf32>
    %cst_82 = arith.constant dense<0.000000e+00> : vector<2x256xf32>
    %106 = tpu.matmul %104, %105, %cst_82 {dimension_numbers = #tpu.dot_dimension_numbers<[1], [0], [0], [1], [0, 0, 1, 1], [], []>} : vector<2x64xf32>, vector<64x256xf32>, vector<2x256xf32> -> vector<2x256xf32>
    %c0_83 = arith.constant 0 : index
    %107 = memref.load %arg20[%c0_83] : memref<1xf32, #tpu.memory_space<smem>>
    %c0_84 = arith.constant 0 : index
    %c0_85 = arith.constant 0 : index
    %108 = vector.load %arg15[%c0_84, %c0_85] : memref<256x16xf32, #tpu.memory_space<vmem>>, vector<256x16xf32>
    %cst_86 = arith.constant dense<0.000000e+00> : vector<2x16xf32>
    %109 = tpu.matmul %11, %108, %cst_86 {dimension_numbers = #tpu.dot_dimension_numbers<[1], [0], [0], [1], [0, 0, 1, 1], [], []>} : vector<2x256xf32>, vector<256x16xf32>, vector<2x16xf32> -> vector<2x16xf32>
    %c0_87 = arith.constant 0 : index
    %c0_88 = arith.constant 0 : index
    %c0_89 = arith.constant 0 : index
    %110 = vector.load %arg17[%c0_87, %c0_88, %c0_89] : memref<25x2x1xf32, #tpu.memory_space<vmem>>, vector<1x2x1xf32>
    %111 = vector.shape_cast %110 : vector<1x2x1xf32> to vector<2x1xf32>
    %c0_90 = arith.constant 0 : index
    %c0_91 = arith.constant 0 : index
    %c0_92 = arith.constant 0 : index
    %112 = vector.load %arg16[%c0_90, %c0_91, %c0_92] : memref<25x16x16xf32, #tpu.memory_space<vmem>>, vector<1x16x16xf32>
    %113 = vector.shape_cast %112 : vector<1x16x16xf32> to vector<16x16xf32>
    %cst_93 = arith.constant dense<0.000000e+00> : vector<2x16xf32>
    %114 = tpu.matmul %109, %113, %cst_93 {dimension_numbers = #tpu.dot_dimension_numbers<[1], [0], [0], [1], [0, 0, 1, 1], [], []>} : vector<2x16xf32>, vector<16x16xf32>, vector<2x16xf32> -> vector<2x16xf32>
    %115 = vector.broadcast %111 : vector<2x1xf32> to vector<2x16xf32>
    %116 = arith.mulf %115, %114 : vector<2x16xf32>
    %c1_94 = arith.constant 1 : index
    %c0_95 = arith.constant 0 : index
    %c0_96 = arith.constant 0 : index
    %117 = vector.load %arg17[%c1_94, %c0_95, %c0_96] : memref<25x2x1xf32, #tpu.memory_space<vmem>>, vector<1x2x1xf32>
    %118 = vector.shape_cast %117 : vector<1x2x1xf32> to vector<2x1xf32>
    %c1_97 = arith.constant 1 : index
    %c0_98 = arith.constant 0 : index
    %c0_99 = arith.constant 0 : index
    %119 = vector.load %arg16[%c1_97, %c0_98, %c0_99] : memref<25x16x16xf32, #tpu.memory_space<vmem>>, vector<1x16x16xf32>
    %120 = vector.shape_cast %119 : vector<1x16x16xf32> to vector<16x16xf32>
    %cst_100 = arith.constant dense<0.000000e+00> : vector<2x16xf32>
    %121 = tpu.matmul %109, %120, %cst_100 {dimension_numbers = #tpu.dot_dimension_numbers<[1], [0], [0], [1], [0, 0, 1, 1], [], []>} : vector<2x16xf32>, vector<16x16xf32>, vector<2x16xf32> -> vector<2x16xf32>
    %122 = vector.broadcast %118 : vector<2x1xf32> to vector<2x16xf32>
    %123 = arith.mulf %122, %121 : vector<2x16xf32>
    %124 = arith.addf %116, %123 : vector<2x16xf32>
    %c2_101 = arith.constant 2 : index
    %c0_102 = arith.constant 0 : index
    %c0_103 = arith.constant 0 : index
    %125 = vector.load %arg17[%c2_101, %c0_102, %c0_103] : memref<25x2x1xf32, #tpu.memory_space<vmem>>, vector<1x2x1xf32>
    %126 = vector.shape_cast %125 : vector<1x2x1xf32> to vector<2x1xf32>
    %c2_104 = arith.constant 2 : index
    %c0_105 = arith.constant 0 : index
    %c0_106 = arith.constant 0 : index
    %127 = vector.load %arg16[%c2_104, %c0_105, %c0_106] : memref<25x16x16xf32, #tpu.memory_space<vmem>>, vector<1x16x16xf32>
    %128 = vector.shape_cast %127 : vector<1x16x16xf32> to vector<16x16xf32>
    %cst_107 = arith.constant dense<0.000000e+00> : vector<2x16xf32>
    %129 = tpu.matmul %109, %128, %cst_107 {dimension_numbers = #tpu.dot_dimension_numbers<[1], [0], [0], [1], [0, 0, 1, 1], [], []>} : vector<2x16xf32>, vector<16x16xf32>, vector<2x16xf32> -> vector<2x16xf32>
    %130 = vector.broadcast %126 : vector<2x1xf32> to vector<2x16xf32>
    %131 = arith.mulf %130, %129 : vector<2x16xf32>
    %132 = arith.addf %124, %131 : vector<2x16xf32>
    %c3_108 = arith.constant 3 : index
    %c0_109 = arith.constant 0 : index
    %c0_110 = arith.constant 0 : index
    %133 = vector.load %arg17[%c3_108, %c0_109, %c0_110] : memref<25x2x1xf32, #tpu.memory_space<vmem>>, vector<1x2x1xf32>
    %134 = vector.shape_cast %133 : vector<1x2x1xf32> to vector<2x1xf32>
    %c3_111 = arith.constant 3 : index
    %c0_112 = arith.constant 0 : index
    %c0_113 = arith.constant 0 : index
    %135 = vector.load %arg16[%c3_111, %c0_112, %c0_113] : memref<25x16x16xf32, #tpu.memory_space<vmem>>, vector<1x16x16xf32>
    %136 = vector.shape_cast %135 : vector<1x16x16xf32> to vector<16x16xf32>
    %cst_114 = arith.constant dense<0.000000e+00> : vector<2x16xf32>
    %137 = tpu.matmul %109, %136, %cst_114 {dimension_numbers = #tpu.dot_dimension_numbers<[1], [0], [0], [1], [0, 0, 1, 1], [], []>} : vector<2x16xf32>, vector<16x16xf32>, vector<2x16xf32> -> vector<2x16xf32>
    %138 = vector.broadcast %134 : vector<2x1xf32> to vector<2x16xf32>
    %139 = arith.mulf %138, %137 : vector<2x16xf32>
    %140 = arith.addf %132, %139 : vector<2x16xf32>
    %c4_115 = arith.constant 4 : index
    %c0_116 = arith.constant 0 : index
    %c0_117 = arith.constant 0 : index
    %141 = vector.load %arg17[%c4_115, %c0_116, %c0_117] : memref<25x2x1xf32, #tpu.memory_space<vmem>>, vector<1x2x1xf32>
    %142 = vector.shape_cast %141 : vector<1x2x1xf32> to vector<2x1xf32>
    %c4_118 = arith.constant 4 : index
    %c0_119 = arith.constant 0 : index
    %c0_120 = arith.constant 0 : index
    %143 = vector.load %arg16[%c4_118, %c0_119, %c0_120] : memref<25x16x16xf32, #tpu.memory_space<vmem>>, vector<1x16x16xf32>
    %144 = vector.shape_cast %143 : vector<1x16x16xf32> to vector<16x16xf32>
    %cst_121 = arith.constant dense<0.000000e+00> : vector<2x16xf32>
    %145 = tpu.matmul %109, %144, %cst_121 {dimension_numbers = #tpu.dot_dimension_numbers<[1], [0], [0], [1], [0, 0, 1, 1], [], []>} : vector<2x16xf32>, vector<16x16xf32>, vector<2x16xf32> -> vector<2x16xf32>
    %146 = vector.broadcast %142 : vector<2x1xf32> to vector<2x16xf32>
    %147 = arith.mulf %146, %145 : vector<2x16xf32>
    %148 = arith.addf %140, %147 : vector<2x16xf32>
    %c5_122 = arith.constant 5 : index
    %c0_123 = arith.constant 0 : index
    %c0_124 = arith.constant 0 : index
    %149 = vector.load %arg17[%c5_122, %c0_123, %c0_124] : memref<25x2x1xf32, #tpu.memory_space<vmem>>, vector<1x2x1xf32>
    %150 = vector.shape_cast %149 : vector<1x2x1xf32> to vector<2x1xf32>
    %c5_125 = arith.constant 5 : index
    %c0_126 = arith.constant 0 : index
    %c0_127 = arith.constant 0 : index
    %151 = vector.load %arg16[%c5_125, %c0_126, %c0_127] : memref<25x16x16xf32, #tpu.memory_space<vmem>>, vector<1x16x16xf32>
    %152 = vector.shape_cast %151 : vector<1x16x16xf32> to vector<16x16xf32>
    %cst_128 = arith.constant dense<0.000000e+00> : vector<2x16xf32>
    %153 = tpu.matmul %109, %152, %cst_128 {dimension_numbers = #tpu.dot_dimension_numbers<[1], [0], [0], [1], [0, 0, 1, 1], [], []>} : vector<2x16xf32>, vector<16x16xf32>, vector<2x16xf32> -> vector<2x16xf32>
    %154 = vector.broadcast %150 : vector<2x1xf32> to vector<2x16xf32>
    %155 = arith.mulf %154, %153 : vector<2x16xf32>
    %156 = arith.addf %148, %155 : vector<2x16xf32>
    %c6_129 = arith.constant 6 : index
    %c0_130 = arith.constant 0 : index
    %c0_131 = arith.constant 0 : index
    %157 = vector.load %arg17[%c6_129, %c0_130, %c0_131] : memref<25x2x1xf32, #tpu.memory_space<vmem>>, vector<1x2x1xf32>
    %158 = vector.shape_cast %157 : vector<1x2x1xf32> to vector<2x1xf32>
    %c6_132 = arith.constant 6 : index
    %c0_133 = arith.constant 0 : index
    %c0_134 = arith.constant 0 : index
    %159 = vector.load %arg16[%c6_132, %c0_133, %c0_134] : memref<25x16x16xf32, #tpu.memory_space<vmem>>, vector<1x16x16xf32>
    %160 = vector.shape_cast %159 : vector<1x16x16xf32> to vector<16x16xf32>
    %cst_135 = arith.constant dense<0.000000e+00> : vector<2x16xf32>
    %161 = tpu.matmul %109, %160, %cst_135 {dimension_numbers = #tpu.dot_dimension_numbers<[1], [0], [0], [1], [0, 0, 1, 1], [], []>} : vector<2x16xf32>, vector<16x16xf32>, vector<2x16xf32> -> vector<2x16xf32>
    %162 = vector.broadcast %158 : vector<2x1xf32> to vector<2x16xf32>
    %163 = arith.mulf %162, %161 : vector<2x16xf32>
    %164 = arith.addf %156, %163 : vector<2x16xf32>
    %c7_136 = arith.constant 7 : index
    %c0_137 = arith.constant 0 : index
    %c0_138 = arith.constant 0 : index
    %165 = vector.load %arg17[%c7_136, %c0_137, %c0_138] : memref<25x2x1xf32, #tpu.memory_space<vmem>>, vector<1x2x1xf32>
    %166 = vector.shape_cast %165 : vector<1x2x1xf32> to vector<2x1xf32>
    %c7_139 = arith.constant 7 : index
    %c0_140 = arith.constant 0 : index
    %c0_141 = arith.constant 0 : index
    %167 = vector.load %arg16[%c7_139, %c0_140, %c0_141] : memref<25x16x16xf32, #tpu.memory_space<vmem>>, vector<1x16x16xf32>
    %168 = vector.shape_cast %167 : vector<1x16x16xf32> to vector<16x16xf32>
    %cst_142 = arith.constant dense<0.000000e+00> : vector<2x16xf32>
    %169 = tpu.matmul %109, %168, %cst_142 {dimension_numbers = #tpu.dot_dimension_numbers<[1], [0], [0], [1], [0, 0, 1, 1], [], []>} : vector<2x16xf32>, vector<16x16xf32>, vector<2x16xf32> -> vector<2x16xf32>
    %170 = vector.broadcast %166 : vector<2x1xf32> to vector<2x16xf32>
    %171 = arith.mulf %170, %169 : vector<2x16xf32>
    %172 = arith.addf %164, %171 : vector<2x16xf32>
    %c8_143 = arith.constant 8 : index
    %c0_144 = arith.constant 0 : index
    %c0_145 = arith.constant 0 : index
    %173 = vector.load %arg17[%c8_143, %c0_144, %c0_145] : memref<25x2x1xf32, #tpu.memory_space<vmem>>, vector<1x2x1xf32>
    %174 = vector.shape_cast %173 : vector<1x2x1xf32> to vector<2x1xf32>
    %c8_146 = arith.constant 8 : index
    %c0_147 = arith.constant 0 : index
    %c0_148 = arith.constant 0 : index
    %175 = vector.load %arg16[%c8_146, %c0_147, %c0_148] : memref<25x16x16xf32, #tpu.memory_space<vmem>>, vector<1x16x16xf32>
    %176 = vector.shape_cast %175 : vector<1x16x16xf32> to vector<16x16xf32>
    %cst_149 = arith.constant dense<0.000000e+00> : vector<2x16xf32>
    %177 = tpu.matmul %109, %176, %cst_149 {dimension_numbers = #tpu.dot_dimension_numbers<[1], [0], [0], [1], [0, 0, 1, 1], [], []>} : vector<2x16xf32>, vector<16x16xf32>, vector<2x16xf32> -> vector<2x16xf32>
    %178 = vector.broadcast %174 : vector<2x1xf32> to vector<2x16xf32>
    %179 = arith.mulf %178, %177 : vector<2x16xf32>
    %180 = arith.addf %172, %179 : vector<2x16xf32>
    %c9 = arith.constant 9 : index
    %c0_150 = arith.constant 0 : index
    %c0_151 = arith.constant 0 : index
    %181 = vector.load %arg17[%c9, %c0_150, %c0_151] : memref<25x2x1xf32, #tpu.memory_space<vmem>>, vector<1x2x1xf32>
    %182 = vector.shape_cast %181 : vector<1x2x1xf32> to vector<2x1xf32>
    %c9_152 = arith.constant 9 : index
    %c0_153 = arith.constant 0 : index
    %c0_154 = arith.constant 0 : index
    %183 = vector.load %arg16[%c9_152, %c0_153, %c0_154] : memref<25x16x16xf32, #tpu.memory_space<vmem>>, vector<1x16x16xf32>
    %184 = vector.shape_cast %183 : vector<1x16x16xf32> to vector<16x16xf32>
    %cst_155 = arith.constant dense<0.000000e+00> : vector<2x16xf32>
    %185 = tpu.matmul %109, %184, %cst_155 {dimension_numbers = #tpu.dot_dimension_numbers<[1], [0], [0], [1], [0, 0, 1, 1], [], []>} : vector<2x16xf32>, vector<16x16xf32>, vector<2x16xf32> -> vector<2x16xf32>
    %186 = vector.broadcast %182 : vector<2x1xf32> to vector<2x16xf32>
    %187 = arith.mulf %186, %185 : vector<2x16xf32>
    %188 = arith.addf %180, %187 : vector<2x16xf32>
    %c10 = arith.constant 10 : index
    %c0_156 = arith.constant 0 : index
    %c0_157 = arith.constant 0 : index
    %189 = vector.load %arg17[%c10, %c0_156, %c0_157] : memref<25x2x1xf32, #tpu.memory_space<vmem>>, vector<1x2x1xf32>
    %190 = vector.shape_cast %189 : vector<1x2x1xf32> to vector<2x1xf32>
    %c10_158 = arith.constant 10 : index
    %c0_159 = arith.constant 0 : index
    %c0_160 = arith.constant 0 : index
    %191 = vector.load %arg16[%c10_158, %c0_159, %c0_160] : memref<25x16x16xf32, #tpu.memory_space<vmem>>, vector<1x16x16xf32>
    %192 = vector.shape_cast %191 : vector<1x16x16xf32> to vector<16x16xf32>
    %cst_161 = arith.constant dense<0.000000e+00> : vector<2x16xf32>
    %193 = tpu.matmul %109, %192, %cst_161 {dimension_numbers = #tpu.dot_dimension_numbers<[1], [0], [0], [1], [0, 0, 1, 1], [], []>} : vector<2x16xf32>, vector<16x16xf32>, vector<2x16xf32> -> vector<2x16xf32>
    %194 = vector.broadcast %190 : vector<2x1xf32> to vector<2x16xf32>
    %195 = arith.mulf %194, %193 : vector<2x16xf32>
    %196 = arith.addf %188, %195 : vector<2x16xf32>
    %c11 = arith.constant 11 : index
    %c0_162 = arith.constant 0 : index
    %c0_163 = arith.constant 0 : index
    %197 = vector.load %arg17[%c11, %c0_162, %c0_163] : memref<25x2x1xf32, #tpu.memory_space<vmem>>, vector<1x2x1xf32>
    %198 = vector.shape_cast %197 : vector<1x2x1xf32> to vector<2x1xf32>
    %c11_164 = arith.constant 11 : index
    %c0_165 = arith.constant 0 : index
    %c0_166 = arith.constant 0 : index
    %199 = vector.load %arg16[%c11_164, %c0_165, %c0_166] : memref<25x16x16xf32, #tpu.memory_space<vmem>>, vector<1x16x16xf32>
    %200 = vector.shape_cast %199 : vector<1x16x16xf32> to vector<16x16xf32>
    %cst_167 = arith.constant dense<0.000000e+00> : vector<2x16xf32>
    %201 = tpu.matmul %109, %200, %cst_167 {dimension_numbers = #tpu.dot_dimension_numbers<[1], [0], [0], [1], [0, 0, 1, 1], [], []>} : vector<2x16xf32>, vector<16x16xf32>, vector<2x16xf32> -> vector<2x16xf32>
    %202 = vector.broadcast %198 : vector<2x1xf32> to vector<2x16xf32>
    %203 = arith.mulf %202, %201 : vector<2x16xf32>
    %204 = arith.addf %196, %203 : vector<2x16xf32>
    %c12 = arith.constant 12 : index
    %c0_168 = arith.constant 0 : index
    %c0_169 = arith.constant 0 : index
    %205 = vector.load %arg17[%c12, %c0_168, %c0_169] : memref<25x2x1xf32, #tpu.memory_space<vmem>>, vector<1x2x1xf32>
    %206 = vector.shape_cast %205 : vector<1x2x1xf32> to vector<2x1xf32>
    %c12_170 = arith.constant 12 : index
    %c0_171 = arith.constant 0 : index
    %c0_172 = arith.constant 0 : index
    %207 = vector.load %arg16[%c12_170, %c0_171, %c0_172] : memref<25x16x16xf32, #tpu.memory_space<vmem>>, vector<1x16x16xf32>
    %208 = vector.shape_cast %207 : vector<1x16x16xf32> to vector<16x16xf32>
    %cst_173 = arith.constant dense<0.000000e+00> : vector<2x16xf32>
    %209 = tpu.matmul %109, %208, %cst_173 {dimension_numbers = #tpu.dot_dimension_numbers<[1], [0], [0], [1], [0, 0, 1, 1], [], []>} : vector<2x16xf32>, vector<16x16xf32>, vector<2x16xf32> -> vector<2x16xf32>
    %210 = vector.broadcast %206 : vector<2x1xf32> to vector<2x16xf32>
    %211 = arith.mulf %210, %209 : vector<2x16xf32>
    %212 = arith.addf %204, %211 : vector<2x16xf32>
    %c13 = arith.constant 13 : index
    %c0_174 = arith.constant 0 : index
    %c0_175 = arith.constant 0 : index
    %213 = vector.load %arg17[%c13, %c0_174, %c0_175] : memref<25x2x1xf32, #tpu.memory_space<vmem>>, vector<1x2x1xf32>
    %214 = vector.shape_cast %213 : vector<1x2x1xf32> to vector<2x1xf32>
    %c13_176 = arith.constant 13 : index
    %c0_177 = arith.constant 0 : index
    %c0_178 = arith.constant 0 : index
    %215 = vector.load %arg16[%c13_176, %c0_177, %c0_178] : memref<25x16x16xf32, #tpu.memory_space<vmem>>, vector<1x16x16xf32>
    %216 = vector.shape_cast %215 : vector<1x16x16xf32> to vector<16x16xf32>
    %cst_179 = arith.constant dense<0.000000e+00> : vector<2x16xf32>
    %217 = tpu.matmul %109, %216, %cst_179 {dimension_numbers = #tpu.dot_dimension_numbers<[1], [0], [0], [1], [0, 0, 1, 1], [], []>} : vector<2x16xf32>, vector<16x16xf32>, vector<2x16xf32> -> vector<2x16xf32>
    %218 = vector.broadcast %214 : vector<2x1xf32> to vector<2x16xf32>
    %219 = arith.mulf %218, %217 : vector<2x16xf32>
    %220 = arith.addf %212, %219 : vector<2x16xf32>
    %c14 = arith.constant 14 : index
    %c0_180 = arith.constant 0 : index
    %c0_181 = arith.constant 0 : index
    %221 = vector.load %arg17[%c14, %c0_180, %c0_181] : memref<25x2x1xf32, #tpu.memory_space<vmem>>, vector<1x2x1xf32>
    %222 = vector.shape_cast %221 : vector<1x2x1xf32> to vector<2x1xf32>
    %c14_182 = arith.constant 14 : index
    %c0_183 = arith.constant 0 : index
    %c0_184 = arith.constant 0 : index
    %223 = vector.load %arg16[%c14_182, %c0_183, %c0_184] : memref<25x16x16xf32, #tpu.memory_space<vmem>>, vector<1x16x16xf32>
    %224 = vector.shape_cast %223 : vector<1x16x16xf32> to vector<16x16xf32>
    %cst_185 = arith.constant dense<0.000000e+00> : vector<2x16xf32>
    %225 = tpu.matmul %109, %224, %cst_185 {dimension_numbers = #tpu.dot_dimension_numbers<[1], [0], [0], [1], [0, 0, 1, 1], [], []>} : vector<2x16xf32>, vector<16x16xf32>, vector<2x16xf32> -> vector<2x16xf32>
    %226 = vector.broadcast %222 : vector<2x1xf32> to vector<2x16xf32>
    %227 = arith.mulf %226, %225 : vector<2x16xf32>
    %228 = arith.addf %220, %227 : vector<2x16xf32>
    %c15 = arith.constant 15 : index
    %c0_186 = arith.constant 0 : index
    %c0_187 = arith.constant 0 : index
    %229 = vector.load %arg17[%c15, %c0_186, %c0_187] : memref<25x2x1xf32, #tpu.memory_space<vmem>>, vector<1x2x1xf32>
    %230 = vector.shape_cast %229 : vector<1x2x1xf32> to vector<2x1xf32>
    %c15_188 = arith.constant 15 : index
    %c0_189 = arith.constant 0 : index
    %c0_190 = arith.constant 0 : index
    %231 = vector.load %arg16[%c15_188, %c0_189, %c0_190] : memref<25x16x16xf32, #tpu.memory_space<vmem>>, vector<1x16x16xf32>
    %232 = vector.shape_cast %231 : vector<1x16x16xf32> to vector<16x16xf32>
    %cst_191 = arith.constant dense<0.000000e+00> : vector<2x16xf32>
    %233 = tpu.matmul %109, %232, %cst_191 {dimension_numbers = #tpu.dot_dimension_numbers<[1], [0], [0], [1], [0, 0, 1, 1], [], []>} : vector<2x16xf32>, vector<16x16xf32>, vector<2x16xf32> -> vector<2x16xf32>
    %234 = vector.broadcast %230 : vector<2x1xf32> to vector<2x16xf32>
    %235 = arith.mulf %234, %233 : vector<2x16xf32>
    %236 = arith.addf %228, %235 : vector<2x16xf32>
    %c16 = arith.constant 16 : index
    %c0_192 = arith.constant 0 : index
    %c0_193 = arith.constant 0 : index
    %237 = vector.load %arg17[%c16, %c0_192, %c0_193] : memref<25x2x1xf32, #tpu.memory_space<vmem>>, vector<1x2x1xf32>
    %238 = vector.shape_cast %237 : vector<1x2x1xf32> to vector<2x1xf32>
    %c16_194 = arith.constant 16 : index
    %c0_195 = arith.constant 0 : index
    %c0_196 = arith.constant 0 : index
    %239 = vector.load %arg16[%c16_194, %c0_195, %c0_196] : memref<25x16x16xf32, #tpu.memory_space<vmem>>, vector<1x16x16xf32>
    %240 = vector.shape_cast %239 : vector<1x16x16xf32> to vector<16x16xf32>
    %cst_197 = arith.constant dense<0.000000e+00> : vector<2x16xf32>
    %241 = tpu.matmul %109, %240, %cst_197 {dimension_numbers = #tpu.dot_dimension_numbers<[1], [0], [0], [1], [0, 0, 1, 1], [], []>} : vector<2x16xf32>, vector<16x16xf32>, vector<2x16xf32> -> vector<2x16xf32>
    %242 = vector.broadcast %238 : vector<2x1xf32> to vector<2x16xf32>
    %243 = arith.mulf %242, %241 : vector<2x16xf32>
    %244 = arith.addf %236, %243 : vector<2x16xf32>
    %c17 = arith.constant 17 : index
    %c0_198 = arith.constant 0 : index
    %c0_199 = arith.constant 0 : index
    %245 = vector.load %arg17[%c17, %c0_198, %c0_199] : memref<25x2x1xf32, #tpu.memory_space<vmem>>, vector<1x2x1xf32>
    %246 = vector.shape_cast %245 : vector<1x2x1xf32> to vector<2x1xf32>
    %c17_200 = arith.constant 17 : index
    %c0_201 = arith.constant 0 : index
    %c0_202 = arith.constant 0 : index
    %247 = vector.load %arg16[%c17_200, %c0_201, %c0_202] : memref<25x16x16xf32, #tpu.memory_space<vmem>>, vector<1x16x16xf32>
    %248 = vector.shape_cast %247 : vector<1x16x16xf32> to vector<16x16xf32>
    %cst_203 = arith.constant dense<0.000000e+00> : vector<2x16xf32>
    %249 = tpu.matmul %109, %248, %cst_203 {dimension_numbers = #tpu.dot_dimension_numbers<[1], [0], [0], [1], [0, 0, 1, 1], [], []>} : vector<2x16xf32>, vector<16x16xf32>, vector<2x16xf32> -> vector<2x16xf32>
    %250 = vector.broadcast %246 : vector<2x1xf32> to vector<2x16xf32>
    %251 = arith.mulf %250, %249 : vector<2x16xf32>
    %252 = arith.addf %244, %251 : vector<2x16xf32>
    %c18 = arith.constant 18 : index
    %c0_204 = arith.constant 0 : index
    %c0_205 = arith.constant 0 : index
    %253 = vector.load %arg17[%c18, %c0_204, %c0_205] : memref<25x2x1xf32, #tpu.memory_space<vmem>>, vector<1x2x1xf32>
    %254 = vector.shape_cast %253 : vector<1x2x1xf32> to vector<2x1xf32>
    %c18_206 = arith.constant 18 : index
    %c0_207 = arith.constant 0 : index
    %c0_208 = arith.constant 0 : index
    %255 = vector.load %arg16[%c18_206, %c0_207, %c0_208] : memref<25x16x16xf32, #tpu.memory_space<vmem>>, vector<1x16x16xf32>
    %256 = vector.shape_cast %255 : vector<1x16x16xf32> to vector<16x16xf32>
    %cst_209 = arith.constant dense<0.000000e+00> : vector<2x16xf32>
    %257 = tpu.matmul %109, %256, %cst_209 {dimension_numbers = #tpu.dot_dimension_numbers<[1], [0], [0], [1], [0, 0, 1, 1], [], []>} : vector<2x16xf32>, vector<16x16xf32>, vector<2x16xf32> -> vector<2x16xf32>
    %258 = vector.broadcast %254 : vector<2x1xf32> to vector<2x16xf32>
    %259 = arith.mulf %258, %257 : vector<2x16xf32>
    %260 = arith.addf %252, %259 : vector<2x16xf32>
    %c19 = arith.constant 19 : index
    %c0_210 = arith.constant 0 : index
    %c0_211 = arith.constant 0 : index
    %261 = vector.load %arg17[%c19, %c0_210, %c0_211] : memref<25x2x1xf32, #tpu.memory_space<vmem>>, vector<1x2x1xf32>
    %262 = vector.shape_cast %261 : vector<1x2x1xf32> to vector<2x1xf32>
    %c19_212 = arith.constant 19 : index
    %c0_213 = arith.constant 0 : index
    %c0_214 = arith.constant 0 : index
    %263 = vector.load %arg16[%c19_212, %c0_213, %c0_214] : memref<25x16x16xf32, #tpu.memory_space<vmem>>, vector<1x16x16xf32>
    %264 = vector.shape_cast %263 : vector<1x16x16xf32> to vector<16x16xf32>
    %cst_215 = arith.constant dense<0.000000e+00> : vector<2x16xf32>
    %265 = tpu.matmul %109, %264, %cst_215 {dimension_numbers = #tpu.dot_dimension_numbers<[1], [0], [0], [1], [0, 0, 1, 1], [], []>} : vector<2x16xf32>, vector<16x16xf32>, vector<2x16xf32> -> vector<2x16xf32>
    %266 = vector.broadcast %262 : vector<2x1xf32> to vector<2x16xf32>
    %267 = arith.mulf %266, %265 : vector<2x16xf32>
    %268 = arith.addf %260, %267 : vector<2x16xf32>
    %c20 = arith.constant 20 : index
    %c0_216 = arith.constant 0 : index
    %c0_217 = arith.constant 0 : index
    %269 = vector.load %arg17[%c20, %c0_216, %c0_217] : memref<25x2x1xf32, #tpu.memory_space<vmem>>, vector<1x2x1xf32>
    %270 = vector.shape_cast %269 : vector<1x2x1xf32> to vector<2x1xf32>
    %c20_218 = arith.constant 20 : index
    %c0_219 = arith.constant 0 : index
    %c0_220 = arith.constant 0 : index
    %271 = vector.load %arg16[%c20_218, %c0_219, %c0_220] : memref<25x16x16xf32, #tpu.memory_space<vmem>>, vector<1x16x16xf32>
    %272 = vector.shape_cast %271 : vector<1x16x16xf32> to vector<16x16xf32>
    %cst_221 = arith.constant dense<0.000000e+00> : vector<2x16xf32>
    %273 = tpu.matmul %109, %272, %cst_221 {dimension_numbers = #tpu.dot_dimension_numbers<[1], [0], [0], [1], [0, 0, 1, 1], [], []>} : vector<2x16xf32>, vector<16x16xf32>, vector<2x16xf32> -> vector<2x16xf32>
    %274 = vector.broadcast %270 : vector<2x1xf32> to vector<2x16xf32>
    %275 = arith.mulf %274, %273 : vector<2x16xf32>
    %276 = arith.addf %268, %275 : vector<2x16xf32>
    %c21 = arith.constant 21 : index
    %c0_222 = arith.constant 0 : index
    %c0_223 = arith.constant 0 : index
    %277 = vector.load %arg17[%c21, %c0_222, %c0_223] : memref<25x2x1xf32, #tpu.memory_space<vmem>>, vector<1x2x1xf32>
    %278 = vector.shape_cast %277 : vector<1x2x1xf32> to vector<2x1xf32>
    %c21_224 = arith.constant 21 : index
    %c0_225 = arith.constant 0 : index
    %c0_226 = arith.constant 0 : index
    %279 = vector.load %arg16[%c21_224, %c0_225, %c0_226] : memref<25x16x16xf32, #tpu.memory_space<vmem>>, vector<1x16x16xf32>
    %280 = vector.shape_cast %279 : vector<1x16x16xf32> to vector<16x16xf32>
    %cst_227 = arith.constant dense<0.000000e+00> : vector<2x16xf32>
    %281 = tpu.matmul %109, %280, %cst_227 {dimension_numbers = #tpu.dot_dimension_numbers<[1], [0], [0], [1], [0, 0, 1, 1], [], []>} : vector<2x16xf32>, vector<16x16xf32>, vector<2x16xf32> -> vector<2x16xf32>
    %282 = vector.broadcast %278 : vector<2x1xf32> to vector<2x16xf32>
    %283 = arith.mulf %282, %281 : vector<2x16xf32>
    %284 = arith.addf %276, %283 : vector<2x16xf32>
    %c22 = arith.constant 22 : index
    %c0_228 = arith.constant 0 : index
    %c0_229 = arith.constant 0 : index
    %285 = vector.load %arg17[%c22, %c0_228, %c0_229] : memref<25x2x1xf32, #tpu.memory_space<vmem>>, vector<1x2x1xf32>
    %286 = vector.shape_cast %285 : vector<1x2x1xf32> to vector<2x1xf32>
    %c22_230 = arith.constant 22 : index
    %c0_231 = arith.constant 0 : index
    %c0_232 = arith.constant 0 : index
    %287 = vector.load %arg16[%c22_230, %c0_231, %c0_232] : memref<25x16x16xf32, #tpu.memory_space<vmem>>, vector<1x16x16xf32>
    %288 = vector.shape_cast %287 : vector<1x16x16xf32> to vector<16x16xf32>
    %cst_233 = arith.constant dense<0.000000e+00> : vector<2x16xf32>
    %289 = tpu.matmul %109, %288, %cst_233 {dimension_numbers = #tpu.dot_dimension_numbers<[1], [0], [0], [1], [0, 0, 1, 1], [], []>} : vector<2x16xf32>, vector<16x16xf32>, vector<2x16xf32> -> vector<2x16xf32>
    %290 = vector.broadcast %286 : vector<2x1xf32> to vector<2x16xf32>
    %291 = arith.mulf %290, %289 : vector<2x16xf32>
    %292 = arith.addf %284, %291 : vector<2x16xf32>
    %c23 = arith.constant 23 : index
    %c0_234 = arith.constant 0 : index
    %c0_235 = arith.constant 0 : index
    %293 = vector.load %arg17[%c23, %c0_234, %c0_235] : memref<25x2x1xf32, #tpu.memory_space<vmem>>, vector<1x2x1xf32>
    %294 = vector.shape_cast %293 : vector<1x2x1xf32> to vector<2x1xf32>
    %c23_236 = arith.constant 23 : index
    %c0_237 = arith.constant 0 : index
    %c0_238 = arith.constant 0 : index
    %295 = vector.load %arg16[%c23_236, %c0_237, %c0_238] : memref<25x16x16xf32, #tpu.memory_space<vmem>>, vector<1x16x16xf32>
    %296 = vector.shape_cast %295 : vector<1x16x16xf32> to vector<16x16xf32>
    %cst_239 = arith.constant dense<0.000000e+00> : vector<2x16xf32>
    %297 = tpu.matmul %109, %296, %cst_239 {dimension_numbers = #tpu.dot_dimension_numbers<[1], [0], [0], [1], [0, 0, 1, 1], [], []>} : vector<2x16xf32>, vector<16x16xf32>, vector<2x16xf32> -> vector<2x16xf32>
    %298 = vector.broadcast %294 : vector<2x1xf32> to vector<2x16xf32>
    %299 = arith.mulf %298, %297 : vector<2x16xf32>
    %300 = arith.addf %292, %299 : vector<2x16xf32>
    %c24 = arith.constant 24 : index
    %c0_240 = arith.constant 0 : index
    %c0_241 = arith.constant 0 : index
    %301 = vector.load %arg17[%c24, %c0_240, %c0_241] : memref<25x2x1xf32, #tpu.memory_space<vmem>>, vector<1x2x1xf32>
    %302 = vector.shape_cast %301 : vector<1x2x1xf32> to vector<2x1xf32>
    %c24_242 = arith.constant 24 : index
    %c0_243 = arith.constant 0 : index
    %c0_244 = arith.constant 0 : index
    %303 = vector.load %arg16[%c24_242, %c0_243, %c0_244] : memref<25x16x16xf32, #tpu.memory_space<vmem>>, vector<1x16x16xf32>
    %304 = vector.shape_cast %303 : vector<1x16x16xf32> to vector<16x16xf32>
    %cst_245 = arith.constant dense<0.000000e+00> : vector<2x16xf32>
    %305 = tpu.matmul %109, %304, %cst_245 {dimension_numbers = #tpu.dot_dimension_numbers<[1], [0], [0], [1], [0, 0, 1, 1], [], []>} : vector<2x16xf32>, vector<16x16xf32>, vector<2x16xf32> -> vector<2x16xf32>
    %306 = vector.broadcast %302 : vector<2x1xf32> to vector<2x16xf32>
    %307 = arith.mulf %306, %305 : vector<2x16xf32>
    %308 = arith.addf %300, %307 : vector<2x16xf32>
    %c0_246 = arith.constant 0 : index
    %c0_247 = arith.constant 0 : index
    %309 = vector.load %arg18[%c0_246, %c0_247] : memref<2x1xf32, #tpu.memory_space<vmem>>, vector<2x1xf32>
    %310 = vector.broadcast %309 : vector<2x1xf32> to vector<2x16xf32>
    %311 = arith.mulf %308, %310 : vector<2x16xf32>
    %c0_248 = arith.constant 0 : index
    %c0_249 = arith.constant 0 : index
    %312 = vector.load %arg19[%c0_248, %c0_249] : memref<2x1xf32, #tpu.memory_space<vmem>>, vector<2x1xf32>
    %313 = vector.broadcast %312 : vector<2x1xf32> to vector<2x16xf32>
    %314 = arith.addf %311, %313 : vector<2x16xf32>
    %cst_250 = arith.constant 0.000000e+00 : f32
    %315 = vector.broadcast %cst_250 : f32 to vector<2x16xf32>
    %316 = arith.cmpf oge, %314, %315 : vector<2x16xf32>
    %317 = vector.broadcast %107 : f32 to vector<2x16xf32>
    %318 = arith.mulf %317, %314 : vector<2x16xf32>
    %319 = arith.select %316, %314, %318 : vector<2x16xi1>, vector<2x16xf32>
    %c0_251 = arith.constant 0 : index
    %c0_252 = arith.constant 0 : index
    %320 = vector.load %arg21[%c0_251, %c0_252] : memref<2x2xf32, #tpu.memory_space<vmem>>, vector<2x2xf32>
    %cst_253 = arith.constant dense<0.000000e+00> : vector<2x16xf32>
    %321 = tpu.matmul %320, %319, %cst_253 {dimension_numbers = #tpu.dot_dimension_numbers<[1], [0], [0], [1], [0, 0, 1, 1], [], []>} : vector<2x2xf32>, vector<2x16xf32>, vector<2x16xf32> -> vector<2x16xf32>
    %c0_254 = arith.constant 0 : index
    %c0_255 = arith.constant 0 : index
    %322 = vector.load %arg22[%c0_254, %c0_255] : memref<2x1xf32, #tpu.memory_space<vmem>>, vector<2x1xf32>
    %323 = vector.broadcast %322 : vector<2x1xf32> to vector<2x16xf32>
    %324 = arith.mulf %321, %323 : vector<2x16xf32>
    %c0_256 = arith.constant 0 : index
    %c0_257 = arith.constant 0 : index
    %325 = vector.load %arg23[%c0_256, %c0_257] : memref<2x1xf32, #tpu.memory_space<vmem>>, vector<2x1xf32>
    %326 = vector.broadcast %325 : vector<2x1xf32> to vector<2x16xf32>
    %327 = arith.addf %324, %326 : vector<2x16xf32>
    %c0_258 = arith.constant 0 : index
    %c0_259 = arith.constant 0 : index
    %328 = vector.load %arg24[%c0_258, %c0_259] : memref<16x256xf32, #tpu.memory_space<vmem>>, vector<16x256xf32>
    %cst_260 = arith.constant dense<0.000000e+00> : vector<2x256xf32>
    %329 = tpu.matmul %327, %328, %cst_260 {dimension_numbers = #tpu.dot_dimension_numbers<[1], [0], [0], [1], [0, 0, 1, 1], [], []>} : vector<2x16xf32>, vector<16x256xf32>, vector<2x256xf32> -> vector<2x256xf32>
    %c0_261 = arith.constant 0 : index
    %c0_262 = arith.constant 0 : index
    %330 = vector.load %arg25[%c0_261, %c0_262] : memref<4x2xf32, #tpu.memory_space<vmem>>, vector<4x2xf32>
    %cst_263 = arith.constant dense<0.000000e+00> : vector<4x256xf32>
    %331 = tpu.matmul %330, %106, %cst_263 {dimension_numbers = #tpu.dot_dimension_numbers<[1], [0], [0], [1], [0, 0, 1, 1], [], []>} : vector<4x2xf32>, vector<2x256xf32>, vector<4x256xf32> -> vector<4x256xf32>
    %c0_264 = arith.constant 0 : index
    %c0_265 = arith.constant 0 : index
    %332 = vector.load %arg26[%c0_264, %c0_265] : memref<4x2xf32, #tpu.memory_space<vmem>>, vector<4x2xf32>
    %cst_266 = arith.constant dense<0.000000e+00> : vector<4x256xf32>
    %333 = tpu.matmul %332, %329, %cst_266 {dimension_numbers = #tpu.dot_dimension_numbers<[1], [0], [0], [1], [0, 0, 1, 1], [], []>} : vector<4x2xf32>, vector<2x256xf32>, vector<4x256xf32> -> vector<4x256xf32>
    %334 = arith.addf %331, %333 : vector<4x256xf32>
    %c0_267 = arith.constant 0 : index
    %c0_268 = arith.constant 0 : index
    %335 = vector.load %arg27[%c0_267, %c0_268] : memref<4x4xf32, #tpu.memory_space<vmem>>, vector<4x4xf32>
    %cst_269 = arith.constant dense<0.000000e+00> : vector<4x256xf32>
    %336 = tpu.matmul %335, %1, %cst_269 {dimension_numbers = #tpu.dot_dimension_numbers<[1], [0], [0], [1], [0, 0, 1, 1], [], []>} : vector<4x4xf32>, vector<4x256xf32>, vector<4x256xf32> -> vector<4x256xf32>
    %337 = arith.addf %334, %336 : vector<4x256xf32>
    %c0_270 = arith.constant 0 : index
    %c0_271 = arith.constant 0 : index
    %338 = vector.load %arg28[%c0_270, %c0_271] : memref<4x1xf32, #tpu.memory_space<vmem>>, vector<4x1xf32>
    %339 = vector.broadcast %338 : vector<4x1xf32> to vector<4x256xf32>
    %340 = arith.addf %337, %339 : vector<4x256xf32>
    %cst_272 = arith.constant 0.000000e+00 : f32
    %341 = vector.broadcast %cst_272 : f32 to vector<4x256xf32>
    %342 = arith.cmpf oge, %340, %341 : vector<4x256xf32>
    %c0_273 = arith.constant 0 : index
    %343 = memref.load %arg29[%c0_273] : memref<1xf32, #tpu.memory_space<smem>>
    %344 = vector.broadcast %343 : f32 to vector<4x256xf32>
    %345 = arith.mulf %344, %340 : vector<4x256xf32>
    %346 = arith.select %342, %340, %345 : vector<4x256xi1>, vector<4x256xf32>
    %c0_274 = arith.constant 0 : index
    %c0_275 = arith.constant 0 : index
    %c0_276 = arith.constant 0 : index
    %347 = vector.load %arg30[%c0_274, %c0_275, %c0_276] : memref<1x4x256xf32, #tpu.memory_space<vmem>>, vector<1x4x256xf32>
    %348 = vector.shape_cast %347 : vector<1x4x256xf32> to vector<4x256xf32>
    %349 = vector.shape_cast %346 : vector<4x256xf32> to vector<1x4x256xf32>
    tpu.vector_store %arg30[%c0_274, %c0_275, %c0_276], %349 {strides = array<i32>} : memref<1x4x256xf32, #tpu.memory_space<vmem>>, vector<1x4x256xf32>,
    return
  }
  func.func @transform_0(%arg0: i32) -> (i32, i32, i32) {
    %c0_i32 = arith.constant 0 : i32
    %c0_i32_0 = arith.constant 0 : i32
    %c0_i32_1 = arith.constant 0 : i32
    return %arg0, %c0_i32, %c0_i32_0 : i32, i32, i32
  }
  func.func @transform_1(%arg0: i32) -> (i32, i32) {
    %c0_i32 = arith.constant 0 : i32
    %c0_i32_0 = arith.constant 0 : i32
    %c0_i32_1 = arith.constant 0 : i32
    return %c0_i32, %c0_i32_0 : i32, i32
  }
  func.func @transform_2(%arg0: i32) -> (i32, i32) {
    %c0_i32 = arith.constant 0 : i32
    %c0_i32_0 = arith.constant 0 : i32
    %c0_i32_1 = arith.constant 0 : i32
    return %c0_i32, %c0_i32_0 : i32, i32
  }
  func.func @transform_3(%arg0: i32) -> (i32, i32) {
    %c0_i32 = arith.constant 0 : i32
    %c0_i32_0 = arith.constant 0 : i32
    %c0_i32_1 = arith.constant 0 : i32
    return %c0_i32, %c0_i32_0 : i32, i32
  }
  func.func @transform_4(%arg0: i32) -> (i32, i32) {
    %c0_i32 = arith.constant 0 : i32
    %c0_i32_0 = arith.constant 0 : i32
    %c0_i32_1 = arith.constant 0 : i32
    return %c0_i32, %c0_i32_0 : i32, i32
  }
  func.func @transform_5(%arg0: i32) -> (i32, i32, i32) {
    %c0_i32 = arith.constant 0 : i32
    %c0_i32_0 = arith.constant 0 : i32
    %c0_i32_1 = arith.constant 0 : i32
    %c0_i32_2 = arith.constant 0 : i32
    return %c0_i32, %c0_i32_0, %c0_i32_1 : i32, i32, i32
  }
  func.func @transform_6(%arg0: i32) -> (i32, i32, i32) {
    %c0_i32 = arith.constant 0 : i32
    %c0_i32_0 = arith.constant 0 : i32
    %c0_i32_1 = arith.constant 0 : i32
    %c0_i32_2 = arith.constant 0 : i32
    return %c0_i32, %c0_i32_0, %c0_i32_1 : i32, i32, i32
  }
  func.func @transform_7(%arg0: i32) -> (i32, i32) {
    %c0_i32 = arith.constant 0 : i32
    %c0_i32_0 = arith.constant 0 : i32
    %c0_i32_1 = arith.constant 0 : i32
    return %c0_i32, %c0_i32_0 : i32, i32
  }
  func.func @transform_8(%arg0: i32) -> (i32, i32) {
    %c0_i32 = arith.constant 0 : i32
    %c0_i32_0 = arith.constant 0 : i32
    %c0_i32_1 = arith.constant 0 : i32
    return %c0_i32, %c0_i32_0 : i32, i32
  }
  func.func @transform_9(%arg0: i32) -> i32 {
    %c0_i32 = arith.constant 0 : i32
    %c0_i32_0 = arith.constant 0 : i32
    return %c0_i32 : i32
  }
  func.func @transform_10(%arg0: i32) -> (i32, i32) {
    %c0_i32 = arith.constant 0 : i32
    %c0_i32_0 = arith.constant 0 : i32
    %c0_i32_1 = arith.constant 0 : i32
    return %c0_i32, %c0_i32_0 : i32, i32
  }
  func.func @transform_11(%arg0: i32) -> (i32, i32) {
    %c0_i32 = arith.constant 0 : i32
    %c0_i32_0 = arith.constant 0 : i32
    %c0_i32_1 = arith.constant 0 : i32
    return %c0_i32, %c0_i32_0 : i32, i32
  }
  func.func @transform_12(%arg0: i32) -> (i32, i32) {
    %c0_i32 = arith.constant 0 : i32
    %c0_i32_0 = arith.constant 0 : i32
    %c0_i32_1 = arith.constant 0 : i32
    return %c0_i32, %c0_i32_0 : i32, i32
  }
  func.func @transform_13(%arg0: i32) -> (i32, i32) {
    %c0_i32 = arith.constant 0 : i32
    %c0_i32_0 = arith.constant 0 : i32
    %c0_i32_1 = arith.constant 0 : i32
    return %c0_i32, %c0_i32_0 : i32, i32
  }
  func.func @transform_14(%arg0: i32) -> (i32, i32) {
    %c0_i32 = arith.constant 0 : i32
    %c0_i32_0 = arith.constant 0 : i32
    %c0_i32_1 = arith.constant 0 : i32
    return %c0_i32, %c0_i32_0 : i32, i32
  }
  func.func @transform_15(%arg0: i32) -> (i32, i32, i32) {
    %c0_i32 = arith.constant 0 : i32
    %c0_i32_0 = arith.constant 0 : i32
    %c0_i32_1 = arith.constant 0 : i32
    %c0_i32_2 = arith.constant 0 : i32
    return %c0_i32, %c0_i32_0, %c0_i32_1 : i32, i32, i32
  }
  func.func @transform_16(%arg0: i32) -> (i32, i32, i32) {
    %c0_i32 = arith.constant 0 : i32
    %c0_i32_0 = arith.constant 0 : i32
    %c0_i32_1 = arith.constant 0 : i32
    %c0_i32_2 = arith.constant 0 : i32
    return %c0_i32, %c0_i32_0, %c0_i32_1 : i32, i32, i32
  }
  func.func @transform_17(%arg0: i32) -> (i32, i32) {
    %c0_i32 = arith.constant 0 : i32
    %c0_i32_0 = arith.constant 0 : i32
    %c0_i32_1 = arith.constant 0 : i32
    return %c0_i32, %c0_i32_0 : i32, i32
  }
  func.func @transform_18(%arg0: i32) -> (i32, i32) {
    %c0_i32 = arith.constant 0 : i32
    %c0_i32_0 = arith.constant 0 : i32
    %c0_i32_1 = arith.constant 0 : i32
    return %c0_i32, %c0_i32_0 : i32, i32
  }
  func.func @transform_19(%arg0: i32) -> i32 {
    %c0_i32 = arith.constant 0 : i32
    %c0_i32_0 = arith.constant 0 : i32
    return %c0_i32 : i32
  }
  func.func @transform_20(%arg0: i32) -> (i32, i32) {
    %c0_i32 = arith.constant 0 : i32
    %c0_i32_0 = arith.constant 0 : i32
    %c0_i32_1 = arith.constant 0 : i32
    return %c0_i32, %c0_i32_0 : i32, i32
  }
  func.func @transform_21(%arg0: i32) -> (i32, i32) {
    %c0_i32 = arith.constant 0 : i32
    %c0_i32_0 = arith.constant 0 : i32
    %c0_i32_1 = arith.constant 0 : i32
    return %c0_i32, %c0_i32_0 : i32, i32
  }
  func.func @transform_22(%arg0: i32) -> (i32, i32) {
    %c0_i32 = arith.constant 0 : i32
    %c0_i32_0 = arith.constant 0 : i32
    %c0_i32_1 = arith.constant 0 : i32
    return %c0_i32, %c0_i32_0 : i32, i32
  }
  func.func @transform_23(%arg0: i32) -> (i32, i32) {
    %c0_i32 = arith.constant 0 : i32
    %c0_i32_0 = arith.constant 0 : i32
    %c0_i32_1 = arith.constant 0 : i32
    return %c0_i32, %c0_i32_0 : i32, i32
  }
  func.func @transform_24(%arg0: i32) -> (i32, i32) {
    %c0_i32 = arith.constant 0 : i32
    %c0_i32_0 = arith.constant 0 : i32
    %c0_i32_1 = arith.constant 0 : i32
    return %c0_i32, %c0_i32_0 : i32, i32
  }
  func.func @transform_25(%arg0: i32) -> (i32, i32) {
    %c0_i32 = arith.constant 0 : i32
    %c0_i32_0 = arith.constant 0 : i32
    %c0_i32_1 = arith.constant 0 : i32
    return %c0_i32, %c0_i32_0 : i32, i32
  }
  func.func @transform_26(%arg0: i32) -> (i32, i32) {
    %c0_i32 = arith.constant 0 : i32
    %c0_i32_0 = arith.constant 0 : i32
    %c0_i32_1 = arith.constant 0 : i32
    return %c0_i32, %c0_i32_0 : i32, i32
  }
  func.func @transform_27(%arg0: i32) -> (i32, i32) {
    %c0_i32 = arith.constant 0 : i32
    %c0_i32_0 = arith.constant 0 : i32
    %c0_i32_1 = arith.constant 0 : i32
    return %c0_i32, %c0_i32_0 : i32, i32
  }
  func.func @transform_28(%arg0: i32) -> i32 {
    %c0_i32 = arith.constant 0 : i32
    %c0_i32_0 = arith.constant 0 : i32
    return %c0_i32 : i32
  }
  func.func @transform_29(%arg0: i32) -> (i32, i32, i32) {
    %c0_i32 = arith.constant 0 : i32
    %c0_i32_0 = arith.constant 0 : i32
    %c0_i32_1 = arith.constant 0 : i32
    return %arg0, %c0_i32, %c0_i32_0 : i32, i32, i32
  }
}

</mosaic_0001>

<bundles_post_ra>
// kernel: tpu_custom_call.1
= control target key start
LH: loop header
LB: loop body
LE: loop exit
PB: predicated region body
PF: predicated region fallthrough
CT: control target
= control target key end

     0   :  { %s5740_s6 = smov 1   ;;  %s5741_s10 = smov 2   ;;  %s6605_s0 = inlined_call_operand.smem [shape: u32[30], index: -1, kind: input, shape index: {}] }
   0x1   :  { %s5781_s5 = sld [smem:[%s6605_s0]]   ;;  %s5742_s14 = smov 3  }
   0x2   :  { %s5786_s9 = sld [smem:[%s6605_s0 + %s5740_s6]]   ;;  %s5743_s18 = smov 4  }
   0x3   :  { %s5791_s13 = sld [smem:[%s6605_s0 + %s5741_s10]]   ;;  %s5744_s22 = smov 5  }
   0x4   :  { %s5796_s17 = sld [smem:[%s6605_s0 + %s5742_s14]]   ;;  %s5745_s26 = smov 6  }
   0x5   :  { %s5801_s21 = sld [smem:[%s6605_s0 + %s5743_s18]]   ;;  %s5746_s30 = smov 7  }
   0x6   :  { %s5806_s25 = sld [smem:[%s6605_s0 + %s5744_s22]]   ;;  %s5747_s4 = smov 8  }
   0x7   :  { %6611 = sst [smem:[#allocation8_spill]] %s5781_s5  ;;  %s5748_s10 = smov 9  }
   0x8   :  { %6612 = sst [smem:[#allocation9_spill]] %s5786_s9  ;;  %s5749_s15 = smov 10  }
   0x9   :  { %6613 = sst [smem:[#allocation10_spill]] %s5791_s13  ;;  %s5750_s20 = smov 11  }
   0xa   :  { %s5811_s29 = sld [smem:[%s6605_s0 + %s5745_s26]]   ;;  %s5751_s26 = smov 12  }
   0xb   :  { %s5816_s3 = sld [smem:[%s6605_s0 + %s5746_s30]]   ;;  %s5752_s1 = smov 13  }
   0xc   :  { %s5821_s8 = sld [smem:[%s6605_s0 + %s5747_s4]]   ;;  %s5753_s7 = smov 14  }
   0xd   :  { %s5826_s14 = sld [smem:[%s6605_s0 + %s5748_s10]]   ;;  %s5755_s22 = smov 16  }
   0xe   :  { %s5831_s19 = sld [smem:[%s6605_s0 + %s5749_s15]]   ;;  %s5754_s15 = smov 15  }
   0xf   :  { %s5836_s24 = sld [smem:[%s6605_s0 + %s5750_s20]]   ;;  %s5756_s28 = smov 17  }
  0x10   :  { %s5841_s30 = sld [smem:[%s6605_s0 + %s5751_s26]]   ;;  %s5759_s23 = smov 20  }
  0x11   :  { %6614 = sst [smem:[#allocation11_spill]] %s5816_s3  ;;  %s5761_s10 = smov 22  }
  0x12   :  { %6615 = sst [smem:[#allocation12_spill]] %s5821_s8 }
  0x13   :  { %s5846_s6 = sld [smem:[%s6605_s0 + %s5752_s1]]   ;;  %s5760_s1 = smov 21  }
  0x14   :  { %6616 = sst [smem:[#allocation13_spill]] %s5831_s19 }
  0x15   :  { %6617 = sst [smem:[#allocation14_spill]] %s5836_s24  ;;  %s5768_s24 = smov 29  }
  0x16   :  { %s5851_s12 = sld [smem:[%s6605_s0 + %s5753_s7]]   ;;  %s5757_s7 = smov 18  }
  0x17   :  { %s5856_s20 = sld [smem:[%s6605_s0 + %s5754_s15]]   ;;  %s5758_s15 = smov 19  }
  0x18   :  { %s5861_s27 = sld [smem:[%s6605_s0 + %s5755_s22]]  }
  0x19   :  { %6618 = sst [smem:[#allocation15_spill]] %s5846_s6 }
  0x1a   :  { %s5866_s4 = sld [smem:[%s6605_s0 + %s5756_s28]]  }
  0x1b   :  { %s5871_s6 = sld [smem:[%s6605_s0 + %s5757_s7]]  }
  0x1c   :  { %6619 = sst [smem:[#allocation16_spill]] %s5851_s12 }
  0x1d   :  { %6620 = sst [smem:[#allocation17_spill]] %s5856_s20 }
  0x1e   :  { %s4795_s19 = sld [smem:[%s6605_s0 + %s5758_s15]]   ;;  %s5762_s15 = smov 23  }
  0x1f   :  { %s5879_s20 = sld [smem:[%s6605_s0 + %s5759_s23]]   ;;  %s5763_s23 = smov 24  }
  0x20   :  { %6621 = sst [smem:[#allocation18_spill]] %s5866_s4 }
  0x21   :  { %6622 = sst [smem:[#allocation19_spill]] %s5871_s6 }
  0x22   :  { %s5884_s12 = sld [smem:[%s6605_s0 + %s5760_s1]]   ;;  %s5764_s1 = smov 25  }
  0x23   :  { %s5889_s6 = sld [smem:[%s6605_s0 + %s5761_s10]]   ;;  %s5765_s10 = smov 26  }
  0x24   :  { %s5894_s22 = sld [smem:[%s6605_s0 + %s5762_s15]]   ;;  %s5766_s15 = smov 27  }
  0x25   :  { %6623 = sst [smem:[#allocation20_spill]] %s5879_s20  ;;  %s5767_s20 = smov 28  }
  0x26   :  { %s5899_s28 = sld [smem:[%s6605_s0 + %s5763_s23]]  }
  0x27   :  { %s5904_s7 = sld [smem:[%s6605_s0 + %s5764_s1]]  }
  0x28   :  { %6624 = sst [smem:[#allocation21_spill]] %s5884_s12 }
  0x29   :  { %6625 = sst [smem:[#allocation22_spill]] %s5889_s6 }
  0x2a   :  { %6626 = sst [smem:[#allocation23_spill]] %s5894_s22 }
  0x2b   :  { %s5909_s3 = sld [smem:[%s6605_s0 + %s5765_s10]]  }
  0x2c   :  { %6627 = sst [smem:[#allocation24_spill]] %s5899_s28 }
  0x2d   :  { %6628 = sst [smem:[#allocation25_spill]] %s5904_s7 }
  0x2e   :  { %s5914_s22 = sld [smem:[%s6605_s0 + %s5766_s15]]  }
  0x2f   :  { %s4804_s28 = sld [smem:[%s6605_s0 + %s5767_s20]]  }
  0x30   :  { %s5922_s7 = sld [smem:[%s6605_s0 + %s5768_s24]]  }
  0x31   :  { %6629 = sst [smem:[#allocation26_spill]] %s5909_s3 }
  0x32   :  { %64 = sst [smem:[#allocation2]] %s5826_s14 }
  0x33   :  { %65 = sst [smem:[#allocation3]] %s4795_s19 }
  0x35   :  { %66 = sst [smem:[#allocation4]] %s4804_s28 }
  0x36   :  { %67 = vsyncpa [#allocation6], 0 }
  0x37   :  { %69 = vsyncpa [#allocation6 + $0x1], 0  ;;  %s5925_s6 = smov 0   ;;  %s5927_s10 = smov 0  }
  0x38   :  { %s5929_s11 = smov 0   ;;  %s5931_s15 = smov 0  }
  0x39 LB: > { %s5946_s0 = sadd.s32 4294967295, %s5738_s15   ;;  %s4807_s14 = sadd.s32 4294967294, %s5738_s15   ;;  %s5738_s15 = sphi %s5931_s15, %s6654_s15   ;;  %s5734_s11 = sphi %s5929_s11, %s6653_s11   ;;  %s5730_s10 = sphi %s5927_s10, %s6652_s10   ;;  %s5726_s6 = sphi %s5925_s6, %s6651_s6  }
  0x3a   : > { %s5950_s19 = sadd.s32 1, %s5738_s15   ;;  %s696_s28 = sadd.s32 1, %s5734_s11 }
  0x3b   : > { %s693_s16 = ssub.s32 %s5738_s15, %s5950_s19  ;;  %p706_p0 = scmp.ne.s32.totalorder %s5734_s11, %s5730_s10 }
  0x3c   : > { %p694_p1 = scmp.eq.s32.totalorder %s693_s16, 0  ;;  %p707_p2 = scmp.eq.s32.totalorder %s5946_s0, 1 }
  0x3d   : > { %p712_p3 = scmp.ne.s32.totalorder %s5730_s10, %s5726_s6  ;;  %p713_p4 = scmp.eq.s32.totalorder %s4807_s14, 1 }
  0x3e   : > { %s5961_s18 = scalar_select %p694_p1, %s5734_s11, %s696_s28  }
  0x3f   : > { %p5963_p5 = por %p707_p2, %p706_p0  ;;  %p5967_p6 = por %p713_p4, %p712_p3 }
  0x40   : > { %p4810_p7 = scmp.ge.s32.totalorder %s5738_s15, 1  ;;  %p823_p8 = scmp.lt.s32.totalorder %s5738_s15, 3 }
  0x42   : > { %p824_p9 = pnand %p4810_p7, %p823_p8 }
  0x43   : > { %s6632_s13 = sld [smem:[#allocation10_spill]] (!%p824_p9)  ;;  %p899_p10 = scmp.lt.s32.totalorder (!%p824_p9), %s5946_s0, 1 }
  0x44   : > { %827 = sbr.rel (%p824_p9) target bundleno = 1840 (0x730), region = 136  ;;  %s6633_s5 = sld [smem:[#allocation8_spill]] (!%p824_p9) }
  0x45   : > { %s6634_s9 = sld [smem:[#allocation9_spill]] (!%p824_p9) }
  0x46   : > { %s6635_s8 = sld [smem:[#allocation12_spill]] (!%p824_p9) }
  0x47   : > { %s6636_s4 = sld [smem:[#allocation18_spill]] (!%p824_p9) }
  0x48   : > { %s6637_s12 = sld [smem:[#allocation21_spill]] (!%p824_p9) }
  0x49   : > { %v988_v0 = vld [vmem:[%s6632_s13] sm:$0x3]  ;;  %v5769_v1 = vmov 0   ;;  %s900_s26 = scalar_select %p899_p10, %s5946_s0, 1  ;;  %v5770_v2 = vmov 0.0   ;;  %vm912_vm0 = vcmask 1043456  }
  0x4a   : > { %5674 = vset.pattern.permute.xlu0 %v5769_v1  ;;  %5675 = vset.pattern.permute.xlu1 %v5769_v1  ;;  %v996_v3 = vld [vmem:[%s5796_s17] sm:$0x3]  ;;  %v4828_v6 = vld [vmem:[%s5811_s29 + $0x4] sm:$0x3]  ;;  %vm908_vm1 = vcmask 31744   ;;  %v1038_v18 = vld [vmem:[%s5801_s21 + $0xf8] sm:$0xff] }
  0x4b   : > { %991 = vperm.xlu0 %5674, %v988_v0   ;;  %981 = vmatprep.mubr.f32.mxu0 %v5770_v2  ;;  %s5015_s24 = sshll.u32 %s900_s26, 3  ;;  %v905_v7 = vld [vmem:[%s6634_s9] sm:$0x3]  ;;  %v4848_v8 = vld [vmem:[%s5811_s29 + $0x8] sm:$0x3]  ;;  %v1022_v20 = vld [vmem:[%s5801_s21 + $0x78] sm:$0xff] }
  0x4c   : > { %s5979_s1 = scalar_lea.vmem %s6633_s5, %s5015_s24  ;;  %v4868_v9 = vld [vmem:[%s5811_s29 + $0xc] sm:$0x3]  ;;  %v4888_v10 = vld [vmem:[%s5811_s29 + $0x10] sm:$0x3]  ;;  %v1909_v11 = vld [vmem:[%s6635_s8] sm:$0x3]  ;;  %5017 = vmatprep.subr.mxu1 %v1038_v18 }
  0x4d   : > { %v904_v4 = vld [vmem:[%s5979_s1] sm:$0xff]  ;;  %v4918_v15 = vld [vmem:[%s5861_s27 + $0xa] sm:$0x3]  ;;  %v4926_v16 = vld [vmem:[%s5861_s27 + $0xe] sm:$0x3]  ;;  %5018 = vmatpush3.msra.mxu1 %v1022_v20  ;;  %s6638_s2 = sld [smem:[#allocation11_spill]] }
  0x4e   : > { %v5982_v5 = vcombine.high %v904_v4, %v904_v4  ;;  %v2006_v12 = vld [vmem:[%s5841_s30] sm:$0x3]  ;;  %v4902_v13 = vld [vmem:[%s5861_s27 + $0x2] sm:$0x3]  ;;  %v4910_v14 = vld [vmem:[%s5861_s27 + $0x6] sm:$0x3] }
  0x4f   : > { %999 = vperm.xlu0 %5674, %v996_v3   ;;  %v4934_v17 = vld [vmem:[%s5861_s27 + $0x12] sm:$0x3]  ;;  %v4942_v19 = vld [vmem:[%s5861_s27 + $0x16] sm:$0x3]  ;;  %v1036_v23 = vld [vmem:[%s5801_s21 + $0xe8] sm:$0xff]  ;;  %vm5771_vm2 = vmmov 0  }
  0x50   : > { %4814 = vmatprep.subr.msk.mxu0 %vm912_vm0, %v5982_v5  ;;  %v1037_v21 = vld [vmem:[%s5801_s21 + $0xf0] sm:$0xff]  ;;  %v4950_v24 = vld [vmem:[%s5861_s27 + $0x1a] sm:$0x3]  ;;  %v1020_v25 = vld [vmem:[%s5801_s21 + $0x68] sm:$0xff]  ;;  %s6639_s14 = sld [smem:[#allocation14_spill]]  ;;  %vm1118_vm3 = vcmask 523264  }
  0x51   : > { %4815 = vmatpush1.msk.msra.mxu0 %vm912_vm0, %v904_v4  ;;  %v1021_v22 = vld [vmem:[%s5801_s21 + $0x70] sm:$0xff]  ;;  %5019 = vmatprep.subr.mxu1 %v1037_v21  ;;  %v1035_v26 = vld [vmem:[%s5801_s21 + $0xe0] sm:$0xff]  ;;  %v1034_v28 = vld [vmem:[%s5801_s21 + $0xd8] sm:$0xff]  ;;  %s6640_s28 = sld [smem:[#allocation19_spill]]  ;;  %vm1925_vm5 = vcmask 1041408   ;;  %vm1921_vm6 = vcmask 15360  }
  0x52   : > { %4816 = vmatmul.mubr.msk.f32.vlgmr.msra.gmra.mxu0 %vm908_vm1, %v905_v7  ;;  %5247 = vmatprep.subr.mxu0 %v5770_v2  ;;  %v1019_v27 = vld [vmem:[%s5801_s21 + $0x60] sm:$0xff]  ;;  %v4958_v29 = vld [vmem:[%s5861_s27 + $0x1e] sm:$0x3]  ;;  %v1033_v31 = vld [vmem:[%s5801_s21 + $0xd0] sm:$0xff]  ;;  %s6641_s16 = sld [smem:[#allocation22_spill]]  ;;  %vm2209_vm7 = vcmask 130048  }
  0x53   : > { %1369 = vperm.xlu0 %5674, %v4828_v6   ;;  %5020 = vmatpush3.msra.mxu1 %v1021_v22  ;;  %v1018_v30 = vld [vmem:[%s5801_s21 + $0x58] sm:$0xff]  ;;  %v1017_v32 = vld [vmem:[%s5801_s21 + $0x50] sm:$0xff]  ;;  %v1032_v33 = vld [vmem:[%s5801_s21 + $0xc8] sm:$0xff]  ;;  %s6642_s26 = sld [smem:[#allocation16_spill]] }
  0x54   : > { %5021 = vmatprep.subr.mxu1 %v1036_v23  ;;  %v4966_v34 = vld [vmem:[%s5861_s27 + $0x22] sm:$0x3]  ;;  %v1016_v35 = vld [vmem:[%s5801_s21 + $0x48] sm:$0xff]  ;;  %v1030_v38 = vld [vmem:[%s5801_s21 + $0xb8] sm:$0xff]  ;;  %5263 = vmatprep.mubr.msk.f32.mxu0 %vm5771_vm2, %v5770_v2  ;;  %s6643_s24 = sld [smem:[#allocation17_spill]] }
  0x55   : > { %5022 = vmatpush3.msra.mxu1 %v1020_v25  ;;  %v1031_v36 = vld [vmem:[%s5801_s21 + $0xc0] sm:$0xff]  ;;  %v1014_v40 = vld [vmem:[%s5801_s21 + $0x38] sm:$0xff]  ;;  %v1029_v41 = vld [vmem:[%s5801_s21 + $0xb0] sm:$0xff]  ;;  %s6649_s5 = sld [smem:[#allocation25_spill]] }
  0x56   : > { %5023 = vmatprep.subr.mxu1 %v1035_v26  ;;  %v1015_v37 = vld [vmem:[%s5801_s21 + $0x40] sm:$0xff]  ;;  %v1013_v42 = vld [vmem:[%s5801_s21 + $0x30] sm:$0xff]  ;;  %v1028_v43 = vld [vmem:[%s5801_s21 + $0xa8] sm:$0xff]  ;;  %s6650_s3 = sld [smem:[#allocation26_spill]] }
  0x57   : > { %1545 = vperm.xlu0 %5674, %v4848_v8   ;;  %5024 = vmatpush3.msra.mxu1 %v1019_v27  ;;  %v4974_v39 = vld [vmem:[%s5861_s27 + $0x26] sm:$0x3]  ;;  %v4982_v44 = vld [vmem:[%s5861_s27 + $0x2a] sm:$0x3]  ;;  %v4990_v47 = vld [vmem:[%s5861_s27 + $0x2e] sm:$0x3] }
  0x58   : > { %5025 = vmatprep.subr.mxu1 %v1034_v28  ;;  %v1012_v45 = vld [vmem:[%s5801_s21 + $0x28] sm:$0xff]  ;;  %v1027_v46 = vld [vmem:[%s5801_s21 + $0xa0] sm:$0xff]  ;;  %v1026_v49 = vld [vmem:[%s5801_s21 + $0x98] sm:$0xff] }
  0x59   : > { %5026 = vmatpush3.msra.mxu1 %v1018_v30  ;;  %v1011_v48 = vld [vmem:[%s5801_s21 + $0x20] sm:$0xff]  ;;  %v1010_v50 = vld [vmem:[%s5801_s21 + $0x18] sm:$0xff]  ;;  %v1025_v51 = vld [vmem:[%s5801_s21 + $0x90] sm:$0xff] }
  0x5a   : > { %5027 = vmatprep.subr.mxu1 %v1033_v31  ;;  %v4257_v52 = vld [vmem:[%s6636_s4] sm:$0x3]  ;;  %v1009_v53 = vld [vmem:[%s5801_s21 + $0x10] sm:$0xff]  ;;  %v1024_v54 = vld [vmem:[%s5801_s21 + $0x88] sm:$0xff]  ;;  %s6648_s4 = sld [smem:[#allocation24_spill]] }
  0x5b   : > { %1721 = vperm.xlu0 %5674, %v4868_v9   ;;  %5028 = vmatpush3.msra.mxu1 %v1017_v32  ;;  %v1008_v55 = vld [vmem:[%s5801_s21 + $0x8] sm:$0xff]  ;;  %v1023_v56 = vld [vmem:[%s5801_s21 + $0x80] sm:$0xff]  ;;  %v1117_v59 = vld [vmem:[%s5806_s25 + $0x38] sm:$0xff] }
  0x5c   : > { %5029 = vmatprep.subr.mxu1 %v1032_v33  ;;  %v1007_v57 = vld [vmem:[%s5801_s21] sm:$0xff]  ;;  %5248 = vmatpush3.msra.mxu0 %v1117_v59  ;;  %v1116_v61 = vld [vmem:[%s5806_s25 + $0x30] sm:$0xff]  ;;  %v1115_v62 = vld [vmem:[%s5806_s25 + $0x28] sm:$0xff] }
  0x5d   : > { %5030 = vmatpush3.msra.mxu1 %v1016_v35  ;;  %v4352_v58 = vld [vmem:[%s6637_s12] sm:$0x3]  ;;  %5249 = vmatprep.subr.mxu0 %v5770_v2  ;;  %v1113_v0 = vld [vmem:[%s5806_s25 + $0x18] sm:$0xff]  ;;  %v1112_v1 = vld [vmem:[%s5806_s25 + $0x10] sm:$0xff]  ;;  %s5772_s12 = smov [#allocation5]  }
  0x5e   : > { %5031 = vmatprep.subr.mxu1 %v1031_v36  ;;  %v4683_v60 = vld [vmem:[%s5914_s22] sm:$0xf]  ;;  %5250 = vmatpush3.msra.mxu0 %v1116_v61  ;;  %v4832_v18 = vld [vmem:[%s5806_s25 + $0x98] sm:$0xff]  ;;  %v1111_v20 = vld [vmem:[%s5806_s25 + $0x8] sm:$0xff]  ;;  %s5682_s13 = sshll.u32 %s5772_s12, 4  ;;  %s5683_s13 = int_to_ptr.vmem [resolvable:$false] %s5682_s13 }
  0x5f   : > { %1897 = vperm.xlu0 %5674, %v4888_v10   ;;  %5032 = vmatpush3.msra.mxu1 %v1015_v37  ;;  %v1114_v63 = vld [vmem:[%s5806_s25 + $0x20] sm:$0xff]  ;;  %v4830_v21 = vld [vmem:[%s5806_s25 + $0x88] sm:$0xff]  ;;  %v4930_v35 = vld [vmem:[%s5861_s27 + $0x10] sm:$0x3] }
  0x60   : > { %5033 = vmatprep.subr.mxu1 %v1030_v38  ;;  %5251 = vmatprep.subr.mxu0 %v5770_v2  ;;  %v1110_v22 = vld [vmem:[%s5806_s25] sm:$0xff]  ;;  %v4858_v27 = vld [vmem:[%s5811_s29 + $0xa] sm:$0x3]  ;;  %v4878_v28 = vld [vmem:[%s5811_s29 + $0xe] sm:$0x3] }
  0x61   : > { %5034 = vmatpush3.msra.mxu1 %v1014_v40  ;;  %5252 = vmatpush3.msra.mxu0 %v1115_v62  ;;  %v4829_v23 = vld [vmem:[%s5806_s25 + $0x80] sm:$0xff]  ;;  %v4914_v33 = vld [vmem:[%s5861_s27 + $0x8] sm:$0x3]  ;;  %v4938_v36 = vld [vmem:[%s5861_s27 + $0x14] sm:$0x3] }
  0x62   : > { %5035 = vmatprep.subr.mxu1 %v1029_v41  ;;  %5253 = vmatprep.subr.mxu0 %v5770_v2  ;;  %v4818_v25 = vld [vmem:[%s5811_s29 + $0x2] sm:$0x3]  ;;  %v4838_v26 = vld [vmem:[%s5811_s29 + $0x6] sm:$0x3]  ;;  %v1999_v30 = vld [vmem:[%s6639_s14] sm:$0x3] }
  0x63   : > { %1912 = vperm.xlu0 %5674, %v1909_v11   ;;  %5036 = vmatpush3.msra.mxu1 %v1013_v42  ;;  %v2206_v31 = vld [vmem:[%s5861_s27] sm:$0x3]  ;;  %v4906_v32 = vld [vmem:[%s5861_s27 + $0x4] sm:$0x3]  ;;  %v4946_v37 = vld [vmem:[%s5861_s27 + $0x18] sm:$0x3] }
  0x64   : > { %5037 = vmatprep.subr.mxu1 %v1028_v43  ;;  %5254 = vmatpush3.msra.mxu0 %v1114_v63  ;;  %v4954_v38 = vld [vmem:[%s5861_s27 + $0x1c] sm:$0x3]  ;;  %v4970_v40 = vld [vmem:[%s5861_s27 + $0x24] sm:$0x3]  ;;  %v4978_v41 = vld [vmem:[%s5861_s27 + $0x28] sm:$0x3] }
  0x65   : > { %5038 = vmatpush3.msra.mxu1 %v1012_v45  ;;  %5255 = vmatprep.subr.mxu0 %v5770_v2  ;;  %v4986_v42 = vld [vmem:[%s5861_s27 + $0x2c] sm:$0x3]  ;;  %v4994_v43 = vld [vmem:[%s5861_s27 + $0x30] sm:$0x3]  ;;  %v4359_v45 = vld [vmem:[%s6641_s16] sm:$0x3] }
  0x66   : > { %5039 = vmatprep.subr.mxu1 %v1027_v46  ;;  %5256 = vmatpush3.msra.mxu0 %v1113_v0  ;;  %v4821_v59 = vld [vmem:[%s5806_s25 + $0x50] sm:$0xff]  ;;  %v4820_v61 = vld [vmem:[%s5806_s25 + $0x48] sm:$0xff]  ;;  %v4819_v63 = vld [vmem:[%s5806_s25 + $0x40] sm:$0xff]  ;;  %s6644_s14 = sld [smem:[#allocation13_spill]] }
  0x67   : > { %2009 = vperm.xlu0 %5674, %v2006_v12   ;;  %5040 = vmatpush3.msra.mxu1 %v1011_v48  ;;  %v4850_v62 = vld [vmem:[%s5806_s25 + $0x108] sm:$0xff]  ;;  %v4849_v0 = vld [vmem:[%s5806_s25 + $0x100] sm:$0xff]  ;;  %s6646_s16 = sld [smem:[#allocation23_spill]] }
  0x68   : > { %5041 = vmatprep.subr.mxu1 %v1026_v49  ;;  %5257 = vmatprep.subr.mxu0 %v5770_v2  ;;  %v4826_v49 = vld [vmem:[%s5806_s25 + $0x78] sm:$0xff] }
  0x69   : > { %5042 = vmatpush3.msra.mxu1 %v1010_v50  ;;  %5258 = vmatpush3.msra.mxu0 %v1112_v1  ;;  %v4856_v50 = vld [vmem:[%s5806_s25 + $0x138] sm:$0xff] }
  0x6a   : > { %5043 = vmatprep.subr.mxu1 %v1025_v51  ;;  %5259 = vmatprep.subr.mxu0 %v5770_v2  ;;  %v4825_v51 = vld [vmem:[%s5806_s25 + $0x70] sm:$0xff]  ;;  %v4846_v1 = vld [vmem:[%s5806_s25 + $0xf8] sm:$0xff] }
  0x6b   : > { %2366 = vperm.xlu0 %5674, %v4902_v13   ;;  %5044 = vmatpush3.msra.mxu1 %v1009_v53  ;;  %v4824_v53 = vld [vmem:[%s5806_s25 + $0x68] sm:$0xff] }
  0x6c   : > { %5045 = vmatprep.subr.mxu1 %v1024_v54  ;;  %5260 = vmatpush3.msra.mxu0 %v1111_v20  ;;  %v4854_v54 = vld [vmem:[%s5806_s25 + $0x128] sm:$0xff] }
  0x6d   : > { %5046 = vmatpush3.msra.mxu1 %v1008_v55  ;;  %5261 = vmatprep.subr.mxu0 %v5770_v2  ;;  %v4823_v55 = vld [vmem:[%s5806_s25 + $0x60] sm:$0xff]  ;;  %v4870_v20 = vld [vmem:[%s5806_s25 + $0x188] sm:$0xff] }
  0x6e   : > { %5047 = vmatprep.subr.mxu1 %v1023_v56  ;;  %5262 = vmatpush3.msra.mxu0 %v1110_v22  ;;  %v4853_v56 = vld [vmem:[%s5806_s25 + $0x120] sm:$0xff] }
  0x6f   : > { %2530 = vperm.xlu0 %5674, %v4910_v14   ;;  %5048 = vmatpush3.msra.mxu1 %v1007_v57  ;;  %v4836_v14 = vld [vmem:[%s5806_s25 + $0xb8] sm:$0xff]  ;;  %v4869_v22 = vld [vmem:[%s5806_s25 + $0x180] sm:$0xff] }
  0x70   : > { %5285 = vmatprep.subr.mxu1 %v5770_v2  ;;  %5266 = vmatprep.subr.mxu0 %v5770_v2  ;;  %v4822_v57 = vld [vmem:[%s5806_s25 + $0x58] sm:$0xff] }
  0x73   : > { %2694 = vperm.xlu0 %5674, %v4918_v15   ;;  %v4835_v15 = vld [vmem:[%s5806_s25 + $0xb0] sm:$0xff] }
  0x77   : > { %2858 = vperm.xlu0 %5674, %v4926_v16   ;;  %v4834_v16 = vld [vmem:[%s5806_s25 + $0xa8] sm:$0xff] }
  0x7b   : > { %3022 = vperm.xlu0 %5674, %v4934_v17   ;;  %v4833_v17 = vld [vmem:[%s5806_s25 + $0xa0] sm:$0xff] }
  0x7f   : > { %3186 = vperm.xlu0 %5674, %v4942_v19   ;;  %v4831_v19 = vld [vmem:[%s5806_s25 + $0x90] sm:$0xff] }
  0x83   : > { %3350 = vperm.xlu0 %5674, %v4950_v24   ;;  %v1109_v24 = vld [vmem:[%s5811_s29] sm:$0x3] }
  0x84   : > { %1194 = vperm.xlu1 %5675, %v1109_v24   ;;  %v4896_v24 = vld [vmem:[%s5806_s25 + $0x238] sm:$0xff] }
  0x87   : > { %3514 = vperm.xlu0 %5674, %v4958_v29   ;;  %v1902_v29 = vld [vmem:[%s6638_s2] sm:$0x3]  ;;  %s1006_s2 = sld [smem:[#allocation2]] }
  0x88   : > { %1281 = vperm.xlu1 %5675, %v4818_v25   ;;  %v4865_v25 = vld [vmem:[%s5806_s25 + $0x170] sm:$0xff] }
  0x8b   : > { %3678 = vperm.xlu0 %5674, %v4966_v34   ;;  %v4922_v34 = vld [vmem:[%s5861_s27 + $0xc] sm:$0x3] }
  0x8c   : > { %1457 = vperm.xlu1 %5675, %v4838_v26   ;;  %v4895_v26 = vld [vmem:[%s5806_s25 + $0x230] sm:$0xff] }
  0x8f   : > { %3842 = vperm.xlu0 %5674, %v4974_v39   ;;  %v4962_v39 = vld [vmem:[%s5861_s27 + $0x20] sm:$0x3] }
  0x90   : > { %1633 = vperm.xlu1 %5675, %v4858_v27   ;;  %v4864_v27 = vld [vmem:[%s5806_s25 + $0x168] sm:$0xff] }
  0x93   : > { %4006 = vperm.xlu0 %5674, %v4982_v44   ;;  %v4264_v44 = vld [vmem:[%s6640_s28] sm:$0x3]  ;;  %s6645_s28 = sld [smem:[#allocation15_spill]] }
  0x94   : > { %1809 = vperm.xlu1 %5675, %v4878_v28   ;;  %v4894_v28 = vld [vmem:[%s5806_s25 + $0x228] sm:$0xff] }
  0x97   : > { %4170 = vperm.xlu0 %5674, %v4990_v47  }
  0x98   : > { %1905 = vperm.xlu1 %5675, %v1902_v29   ;;  %v4863_v29 = vld [vmem:[%s5806_s25 + $0x160] sm:$0xff] }
  0x9b   : > { %4260 = vperm.xlu0 %5674, %v4257_v52   ;;  %v4855_v52 = vld [vmem:[%s5806_s25 + $0x130] sm:$0xff] }
  0x9c   : > { %2002 = vperm.xlu1 %5675, %v1999_v30   ;;  %v4893_v30 = vld [vmem:[%s5806_s25 + $0x220] sm:$0xff] }
  0x9f   : > { %4355 = vperm.xlu0 %5674, %v4352_v58   ;;  %v4852_v58 = vld [vmem:[%s5806_s25 + $0x118] sm:$0xff] }
  0xa0   : > { %2285 = vperm.xlu1 %5675, %v2206_v31   ;;  %v4862_v31 = vld [vmem:[%s5806_s25 + $0x158] sm:$0xff] }
  0xa3   : > { %4686 = vperm.xlu0 %5674, %v4683_v60   ;;  %v4851_v60 = vld [vmem:[%s5806_s25 + $0x110] sm:$0xff] }
  0xa4   : > { %2448 = vperm.xlu1 %5675, %v4906_v32   ;;  %v4892_v32 = vld [vmem:[%s5806_s25 + $0x218] sm:$0xff] }
  0xa8   : > { %2612 = vperm.xlu1 %5675, %v4914_v33   ;;  %v4861_v33 = vld [vmem:[%s5806_s25 + $0x150] sm:$0xff] }
  0xac   : > { %2776 = vperm.xlu1 %5675, %v4922_v34   ;;  %v4891_v34 = vld [vmem:[%s5806_s25 + $0x210] sm:$0xff] }
  0xb0   : > { %2940 = vperm.xlu1 %5675, %v4930_v35   ;;  %v4860_v35 = vld [vmem:[%s5806_s25 + $0x148] sm:$0xff] }
  0xb4   : > { %3104 = vperm.xlu1 %5675, %v4938_v36   ;;  %v4890_v36 = vld [vmem:[%s5806_s25 + $0x208] sm:$0xff] }
  0xb8   : > { %3268 = vperm.xlu1 %5675, %v4946_v37   ;;  %v4859_v37 = vld [vmem:[%s5806_s25 + $0x140] sm:$0xff] }
  0xbc   : > { %3432 = vperm.xlu1 %5675, %v4954_v38   ;;  %v4889_v38 = vld [vmem:[%s5806_s25 + $0x200] sm:$0xff] }
  0xc0   : > { %3596 = vperm.xlu1 %5675, %v4962_v39   ;;  %v2135_v39 = vld [vmem:[%s6642_s26 + $0xf8] sm:$0xff] }
  0xc4   : > { %3760 = vperm.xlu1 %5675, %v4970_v40   ;;  %v4886_v40 = vld [vmem:[%s5806_s25 + $0x1f8] sm:$0xff] }
  0xc6   : > { %v992_v3 = vpop.permute.xlu0 %991 }
  0xc8   : > { %3924 = vperm.xlu1 %5675, %v4978_v41   ;;  %v2119_v41 = vld [vmem:[%s6642_s26 + $0x78] sm:$0xff] }
  0xca   : > { %v1000_v8 = vpop.permute.xlu0 %999 }
  0xcc   : > { %4088 = vperm.xlu1 %5675, %v4986_v42   ;;  %v2134_v42 = vld [vmem:[%s6642_s26 + $0xf0] sm:$0xff] }
  0xd0   : > { %4252 = vperm.xlu1 %5675, %v4994_v43   ;;  %v4885_v43 = vld [vmem:[%s5806_s25 + $0x1f0] sm:$0xff] }
  0xd4   : > { %4267 = vperm.xlu1 %5675, %v4264_v44   ;;  %v2118_v44 = vld [vmem:[%s6642_s26 + $0x70] sm:$0xff] }
  0xd8   : > { %4362 = vperm.xlu1 %5675, %v4359_v45   ;;  %v2133_v45 = vld [vmem:[%s6642_s26 + $0xe8] sm:$0xff] }
 0x112   : > { %v983_v4 = vpop.f32.mrf.mxu0 }
 0x113   : > { %v994_v6 = vmul.f32 %v992_v3, %v983_v4  ;;  %v4845_v4 = vld [vmem:[%s5806_s25 + $0xf0] sm:$0xff] }
 0x114   : > { %v985_v7 = vpop.f32.mrf.mxu0 }
 0x115   : > { %v995_v9 = vmul.f32 %v992_v3, %v985_v7  ;;  %v6056_v10 = vadd.f32 %v1000_v8, %v994_v6  ;;  %v4876_v3 = vld [vmem:[%s5806_s25 + $0x1b8] sm:$0xff]  ;;  %v4875_v6 = vld [vmem:[%s5806_s25 + $0x1b0] sm:$0xff]  ;;  %v4844_v7 = vld [vmem:[%s5806_s25 + $0xe8] sm:$0xff] }
 0x117   : > { %v6058_v11 = vadd.f32 %v1000_v8, %v995_v9  ;;  %v1004_v13 = vmax.f32 %v6056_v10, 0.0  ;;  %v4874_v8 = vld [vmem:[%s5806_s25 + $0x1a8] sm:$0xff]  ;;  %v4843_v9 = vld [vmem:[%s5806_s25 + $0xe0] sm:$0xff] }
 0x119   : > { %v1005_v12 = vmax.f32 %v6058_v11, 0.0  ;;  %v2116_v11 = vld [vmem:[%s6642_s26 + $0x60] sm:$0xff] }
 0x11b   : > { %1103 = vmatprep.mubr.f32.mxu1 %v1005_v12 }
 0x11c   : > { %1104 = vmatmul.mubr.f32.vlgmr.msra.gmra.mxu1 %v1004_v13 }
 0x11d   : > { %5286 = vmatpush3.msra.mxu1 %v4836_v14  ;;  %5301 = vmatprep.mubr.msk.f32.mxu1 %vm5771_vm2, %v5770_v2  ;;  %v4873_v14 = vld [vmem:[%s5806_s25 + $0x1a0] sm:$0xff] }
 0x11e   : > { %5287 = vmatprep.subr.mxu1 %v5770_v2 }
 0x11f   : > { %5288 = vmatpush3.msra.mxu1 %v4835_v15  ;;  %v4842_v15 = vld [vmem:[%s5806_s25 + $0xd8] sm:$0xff] }
 0x120   : > { %5289 = vmatprep.subr.mxu1 %v5770_v2 }
 0x121   : > { %5290 = vmatpush3.msra.mxu1 %v4834_v16  ;;  %v4872_v16 = vld [vmem:[%s5806_s25 + $0x198] sm:$0xff] }
 0x122   : > { %5291 = vmatprep.subr.mxu1 %v5770_v2 }
 0x123   : > { %5292 = vmatpush3.msra.mxu1 %v4833_v17  ;;  %v4841_v17 = vld [vmem:[%s5806_s25 + $0xd0] sm:$0xff] }
 0x124   : > { %5293 = vmatprep.subr.mxu1 %v5770_v2 }
 0x125   : > { %5294 = vmatpush3.msra.mxu1 %v4832_v18  ;;  %v4871_v18 = vld [vmem:[%s5806_s25 + $0x190] sm:$0xff] }
 0x126   : > { %5295 = vmatprep.subr.mxu1 %v5770_v2 }
 0x127   : > { %5296 = vmatpush3.msra.mxu1 %v4831_v19  ;;  %v4840_v19 = vld [vmem:[%s5806_s25 + $0xc8] sm:$0xff] }
 0x128   : > { %5297 = vmatprep.subr.mxu1 %v5770_v2 }
 0x129   : > { %5298 = vmatpush3.msra.mxu1 %v4830_v21  ;;  %v4839_v21 = vld [vmem:[%s5806_s25 + $0xc0] sm:$0xff] }
 0x12a   : > { %5299 = vmatprep.subr.mxu1 %v5770_v2 }
 0x12b   : > { %5300 = vmatpush3.msra.mxu1 %v4829_v23  ;;  %v4866_v23 = vld [vmem:[%s5806_s25 + $0x178] sm:$0xff] }
 0x12c   : > { %5323 = vmatprep.subr.mxu1 %v5770_v2 }
 0x1dc   : > { %v5049_v46 = vpop.f32.mrf.mxu1 }
 0x1de   : > { %v5050_v47 = vpop.f32.mrf.mxu1 }
 0x1df   : > { %v6112_v48 = vadd.f32 %v5050_v47, %v5049_v46  ;;  %v4884_v46 = vld [vmem:[%s5806_s25 + $0x1e8] sm:$0xff] }
 0x1e0   : > { %v2117_v47 = vld [vmem:[%s6642_s26 + $0x68] sm:$0xff] }
 0x1e1   : > { %5264 = vmatmul.mubr.msk.f32.vlgmr.msra.gmra.mxu0 %vm1118_vm3, %v6112_v48  ;;  %5302 = vmatmul.mubr.msk.f32.vlgmr.msra.gmra.mxu1 %vm1118_vm3, %v6112_v48 }
 0x1e2   : > { %5267 = vmatpush3.msra.mxu0 %v4826_v49  ;;  %5324 = vmatpush3.msra.mxu1 %v4856_v50  ;;  %v2132_v49 = vld [vmem:[%s6642_s26 + $0xe0] sm:$0xff] }
 0x1e3   : > { %5268 = vmatprep.subr.mxu0 %v5770_v2  ;;  %5325 = vmatprep.subr.mxu1 %v5770_v2  ;;  %v4883_v50 = vld [vmem:[%s5806_s25 + $0x1e0] sm:$0xff] }
 0x1e4   : > { %5269 = vmatpush3.msra.mxu0 %v4825_v51  ;;  %5326 = vmatpush3.msra.mxu1 %v4855_v52  ;;  %v4882_v51 = vld [vmem:[%s5806_s25 + $0x1d8] sm:$0xff] }
 0x1e5   : > { %5270 = vmatprep.subr.mxu0 %v5770_v2  ;;  %5327 = vmatprep.subr.mxu1 %v5770_v2  ;;  %v2115_v52 = vld [vmem:[%s6642_s26 + $0x58] sm:$0xff] }
 0x1e6   : > { %5271 = vmatpush3.msra.mxu0 %v4824_v53  ;;  %5328 = vmatpush3.msra.mxu1 %v4854_v54  ;;  %v2130_v53 = vld [vmem:[%s6642_s26 + $0xd0] sm:$0xff] }
 0x1e7   : > { %5272 = vmatprep.subr.mxu0 %v5770_v2  ;;  %5329 = vmatprep.subr.mxu1 %v5770_v2  ;;  %v4881_v54 = vld [vmem:[%s5806_s25 + $0x1d0] sm:$0xff] }
 0x1e8   : > { %5273 = vmatpush3.msra.mxu0 %v4823_v55  ;;  %5330 = vmatpush3.msra.mxu1 %v4853_v56  ;;  %v2114_v55 = vld [vmem:[%s6642_s26 + $0x50] sm:$0xff]  ;;  %v2129_v56 = vld [vmem:[%s6642_s26 + $0xc8] sm:$0xff] }
 0x1e9   : > { %5274 = vmatprep.subr.mxu0 %v5770_v2  ;;  %5331 = vmatprep.subr.mxu1 %v5770_v2 }
 0x1ea   : > { %5275 = vmatpush3.msra.mxu0 %v4822_v57  ;;  %5332 = vmatpush3.msra.mxu1 %v4852_v58  ;;  %v4880_v57 = vld [vmem:[%s5806_s25 + $0x1c8] sm:$0xff] }
 0x1eb   : > { %5276 = vmatprep.subr.mxu0 %v5770_v2  ;;  %5333 = vmatprep.subr.mxu1 %v5770_v2  ;;  %v2113_v58 = vld [vmem:[%s6642_s26 + $0x48] sm:$0xff] }
 0x1ec   : > { %5277 = vmatpush3.msra.mxu0 %v4821_v59  ;;  %5334 = vmatpush3.msra.mxu1 %v4851_v60  ;;  %v2128_v59 = vld [vmem:[%s6642_s26 + $0xc0] sm:$0xff] }
 0x1ed   : > { %5278 = vmatprep.subr.mxu0 %v5770_v2  ;;  %5335 = vmatprep.subr.mxu1 %v5770_v2  ;;  %v4879_v60 = vld [vmem:[%s5806_s25 + $0x1c0] sm:$0xff] }
 0x1ee   : > { %5279 = vmatpush3.msra.mxu0 %v4820_v61  ;;  %5336 = vmatpush3.msra.mxu1 %v4850_v62  ;;  %v2112_v61 = vld [vmem:[%s6642_s26 + $0x40] sm:$0xff]  ;;  %v2127_v62 = vld [vmem:[%s6642_s26 + $0xb8] sm:$0xff] }
 0x1ef   : > { %5280 = vmatprep.subr.mxu0 %v5770_v2  ;;  %5337 = vmatprep.subr.mxu1 %v5770_v2 }
 0x1f0   : > { %5281 = vmatpush3.msra.mxu0 %v4819_v63  ;;  %5282 = vmatprep.mubr.msk.f32.mxu0 %vm5771_vm2, %v5770_v2  ;;  %v2111_v63 = vld [vmem:[%s6642_s26 + $0x38] sm:$0xff] }
 0x1f1   : > { %5338 = vmatpush3.msra.mxu1 %v4849_v0  ;;  %5339 = vmatprep.mubr.msk.f32.mxu1 %vm5771_vm2, %v5770_v2  ;;  %v2126_v0 = vld [vmem:[%s6642_s26 + $0xb0] sm:$0xff] }
 0x1f2   : > { %5283 = vmatmul.mubr.msk.f32.vlgmr.msra.gmra.mxu0 %vm1118_vm3, %v6112_v48  ;;  %5304 = vmatprep.subr.mxu0 %v5770_v2 }
 0x1f3   : > { %5340 = vmatmul.mubr.msk.f32.vlgmr.msra.gmra.mxu1 %vm1118_vm3, %v6112_v48  ;;  %5361 = vmatprep.subr.mxu1 %v5770_v2 }
 0x1f4   : > { %5305 = vmatpush3.msra.mxu0 %v4846_v1  ;;  %5362 = vmatpush3.msra.mxu1 %v4876_v3  ;;  %v2110_v1 = vld [vmem:[%s6642_s26 + $0x30] sm:$0xff]  ;;  %v2125_v3 = vld [vmem:[%s6642_s26 + $0xa8] sm:$0xff] }
 0x1f5   : > { %5306 = vmatprep.subr.mxu0 %v5770_v2  ;;  %5363 = vmatprep.subr.mxu1 %v5770_v2 }
 0x1f6   : > { %5307 = vmatpush3.msra.mxu0 %v4845_v4  ;;  %5364 = vmatpush3.msra.mxu1 %v4875_v6  ;;  %v2109_v4 = vld [vmem:[%s6642_s26 + $0x28] sm:$0xff]  ;;  %v2124_v6 = vld [vmem:[%s6642_s26 + $0xa0] sm:$0xff] }
 0x1f7   : > { %5308 = vmatprep.subr.mxu0 %v5770_v2  ;;  %5365 = vmatprep.subr.mxu1 %v5770_v2 }
 0x1f8   : > { %5309 = vmatpush3.msra.mxu0 %v4844_v7  ;;  %5366 = vmatpush3.msra.mxu1 %v4874_v8  ;;  %v2123_v7 = vld [vmem:[%s6642_s26 + $0x98] sm:$0xff] }
 0x1f9   : > { %5310 = vmatprep.subr.mxu0 %v5770_v2  ;;  %5367 = vmatprep.subr.mxu1 %v5770_v2  ;;  %v2107_v8 = vld [vmem:[%s6642_s26 + $0x18] sm:$0xff] }
 0x1fa   : > { %5311 = vmatpush3.msra.mxu0 %v4843_v9  ;;  %5368 = vmatpush3.msra.mxu1 %v4873_v14  ;;  %v2122_v9 = vld [vmem:[%s6642_s26 + $0x90] sm:$0xff] }
 0x1fb   : > { %5312 = vmatprep.subr.mxu0 %v5770_v2  ;;  %5369 = vmatprep.subr.mxu1 %v5770_v2  ;;  %v2106_v14 = vld [vmem:[%s6642_s26 + $0x10] sm:$0xff] }
 0x1fc   : > { %5313 = vmatpush3.msra.mxu0 %v4842_v15  ;;  %5370 = vmatpush3.msra.mxu1 %v4872_v16  ;;  %v2121_v15 = vld [vmem:[%s6642_s26 + $0x88] sm:$0xff] }
 0x1fd   : > { %5314 = vmatprep.subr.mxu0 %v5770_v2  ;;  %5371 = vmatprep.subr.mxu1 %v5770_v2  ;;  %v2105_v16 = vld [vmem:[%s6642_s26 + $0x8] sm:$0xff] }
 0x1fe   : > { %5315 = vmatpush3.msra.mxu0 %v4841_v17  ;;  %5372 = vmatpush3.msra.mxu1 %v4871_v18  ;;  %v2120_v17 = vld [vmem:[%s6642_s26 + $0x80] sm:$0xff] }
 0x1ff   : > { %5316 = vmatprep.subr.mxu0 %v5770_v2  ;;  %5373 = vmatprep.subr.mxu1 %v5770_v2  ;;  %v2104_v18 = vld [vmem:[%s6642_s26] sm:$0xff] }
 0x200   : > { %5317 = vmatpush3.msra.mxu0 %v4840_v19  ;;  %5374 = vmatpush3.msra.mxu1 %v4870_v20  ;;  %v4928_v19 = vld [vmem:[%s6643_s24 + $0x78] sm:$0xff]  ;;  %v4927_v20 = vld [vmem:[%s6643_s24 + $0x70] sm:$0xff] }
 0x201   : > { %5318 = vmatprep.subr.mxu0 %v5770_v2  ;;  %5375 = vmatprep.subr.mxu1 %v5770_v2 }
 0x202   : > { %5319 = vmatpush3.msra.mxu0 %v4839_v21  ;;  %5320 = vmatprep.mubr.msk.f32.mxu0 %vm5771_vm2, %v5770_v2 }
 0x203   : > { %5376 = vmatpush3.msra.mxu1 %v4869_v22  ;;  %5377 = vmatprep.mubr.msk.f32.mxu1 %vm5771_vm2, %v5770_v2 }
 0x204   : > { %5321 = vmatmul.mubr.msk.f32.vlgmr.msra.gmra.mxu0 %vm1118_vm3, %v6112_v48  ;;  %5342 = vmatprep.subr.mxu0 %v5770_v2 }
 0x205   : > { %5378 = vmatmul.mubr.msk.f32.vlgmr.msra.gmra.mxu1 %vm1118_vm3, %v6112_v48  ;;  %5399 = vmatprep.subr.mxu1 %v5770_v2 }
 0x206   : > { %5343 = vmatpush3.msra.mxu0 %v4866_v23  ;;  %5400 = vmatpush3.msra.mxu1 %v4896_v24 }
 0x207   : > { %5344 = vmatprep.subr.mxu0 %v5770_v2  ;;  %5401 = vmatprep.subr.mxu1 %v5770_v2 }
 0x208   : > { %5345 = vmatpush3.msra.mxu0 %v4865_v25  ;;  %5402 = vmatpush3.msra.mxu1 %v4895_v26 }
 0x209   : > { %5346 = vmatprep.subr.mxu0 %v5770_v2  ;;  %5403 = vmatprep.subr.mxu1 %v5770_v2 }
 0x20a   : > { %5347 = vmatpush3.msra.mxu0 %v4864_v27  ;;  %5404 = vmatpush3.msra.mxu1 %v4894_v28 }
 0x20b   : > { %5348 = vmatprep.subr.mxu0 %v5770_v2  ;;  %5405 = vmatprep.subr.mxu1 %v5770_v2 }
 0x20c   : > { %5349 = vmatpush3.msra.mxu0 %v4863_v29  ;;  %5406 = vmatpush3.msra.mxu1 %v4893_v30 }
 0x20d   : > { %5350 = vmatprep.subr.mxu0 %v5770_v2  ;;  %5407 = vmatprep.subr.mxu1 %v5770_v2 }
 0x20e   : > { %5351 = vmatpush3.msra.mxu0 %v4862_v31  ;;  %5408 = vmatpush3.msra.mxu1 %v4892_v32  ;;  %v1195_v31 = vpop.permute.xlu1 %1194 }
 0x20f   : > { %5352 = vmatprep.subr.mxu0 %v5770_v2  ;;  %5409 = vmatprep.subr.mxu1 %v5770_v2 }
 0x210   : > { %5353 = vmatpush3.msra.mxu0 %v4861_v33  ;;  %5410 = vmatpush3.msra.mxu1 %v4891_v34 }
 0x211   : > { %5354 = vmatprep.subr.mxu0 %v5770_v2  ;;  %5411 = vmatprep.subr.mxu1 %v5770_v2 }
 0x212   : > { %5355 = vmatpush3.msra.mxu0 %v4860_v35  ;;  %5412 = vmatpush3.msra.mxu1 %v4890_v36  ;;  %v1282_v32 = vpop.permute.xlu1 %1281 }
 0x213   : > { %5356 = vmatprep.subr.mxu0 %v5770_v2  ;;  %5413 = vmatprep.subr.mxu1 %v5770_v2 }
 0x214   : > { %5357 = vmatpush3.msra.mxu0 %v4859_v37  ;;  %5358 = vmatprep.mubr.msk.f32.mxu0 %vm5771_vm2, %v5770_v2  ;;  %v1370_v37 = vpop.permute.xlu0 %1369 }
 0x215   : > { %5414 = vmatpush3.msra.mxu1 %v4889_v38  ;;  %5415 = vmatprep.mubr.msk.f32.mxu1 %vm5771_vm2, %v5770_v2 }
 0x216   : > { %5359 = vmatmul.mubr.msk.f32.vlgmr.msra.gmra.mxu0 %vm1118_vm3, %v6112_v48  ;;  %5380 = vmatprep.subr.mxu0 %v5770_v2 }
 0x217   : > { %5416 = vmatmul.mubr.msk.f32.vlgmr.msra.gmra.mxu1 %vm1118_vm3, %v6112_v48  ;;  %5135 = vmatprep.subr.mxu1 %v2135_v39 }
 0x218   : > { %5381 = vmatpush3.msra.mxu0 %v4886_v40  ;;  %5136 = vmatpush3.msra.mxu1 %v2119_v41  ;;  %v1458_v41 = vpop.permute.xlu1 %1457 }
 0x219   : > { %2200 = vmatprep.mubr.f32.mxu1 %v1005_v12  ;;  %5382 = vmatprep.subr.mxu0 %v5770_v2  ;;  %v2131_v12 = vld [vmem:[%s6642_s26 + $0xd8] sm:$0xff] }
 0x21a   : > { %5137 = vmatprep.subr.mxu1 %v2134_v42  ;;  %5383 = vmatpush3.msra.mxu0 %v4885_v43 }
 0x21b   : > { %5138 = vmatpush3.msra.mxu1 %v2118_v44  ;;  %5384 = vmatprep.subr.mxu0 %v5770_v2 }
 0x21c   : > { %5139 = vmatprep.subr.mxu1 %v2133_v45  ;;  %5385 = vmatpush3.msra.mxu0 %v4884_v46  ;;  %v1546_v45 = vpop.permute.xlu0 %1545 }
 0x21d   : > { %5140 = vmatpush3.msra.mxu1 %v2117_v47  ;;  %5386 = vmatprep.subr.mxu0 %v5770_v2  ;;  %v1634_v47 = vpop.permute.xlu1 %1633 }
 0x21e   : > { %5141 = vmatprep.subr.mxu1 %v2132_v49  ;;  %5387 = vmatpush3.msra.mxu0 %v4883_v50 }
 0x21f   : > { %5142 = vmatpush3.msra.mxu1 %v2116_v11  ;;  %5388 = vmatprep.subr.mxu0 %v5770_v2 }
 0x220   : > { %5143 = vmatprep.subr.mxu1 %v2131_v12  ;;  %5389 = vmatpush3.msra.mxu0 %v4882_v51  ;;  %v1722_v12 = vpop.permute.xlu0 %1721 }
 0x221   : > { %5144 = vmatpush3.msra.mxu1 %v2115_v52  ;;  %5390 = vmatprep.subr.mxu0 %v5770_v2 }
 0x222   : > { %5145 = vmatprep.subr.mxu1 %v2130_v53  ;;  %5391 = vmatpush3.msra.mxu0 %v4881_v54  ;;  %v1810_v53 = vpop.permute.xlu1 %1809 }
 0x223   : > { %5146 = vmatpush3.msra.mxu1 %v2114_v55  ;;  %5392 = vmatprep.subr.mxu0 %v5770_v2 }
 0x224   : > { %5147 = vmatprep.subr.mxu1 %v2129_v56  ;;  %5393 = vmatpush3.msra.mxu0 %v4880_v57  ;;  %v1898_v57 = vpop.permute.xlu0 %1897 }
 0x225   : > { %5148 = vmatpush3.msra.mxu1 %v2113_v58  ;;  %5394 = vmatprep.subr.mxu0 %v5770_v2 }
 0x226   : > { %5149 = vmatprep.subr.mxu1 %v2128_v59  ;;  %5395 = vmatpush3.msra.mxu0 %v4879_v60 }
 0x227   : > { %5396 = vmatprep.mubr.msk.f32.mxu0 %vm5771_vm2, %v5770_v2  ;;  %5150 = vmatpush3.msra.mxu1 %v2112_v61 }
 0x228   : > { %5397 = vmatmul.mubr.msk.f32.vlgmr.msra.gmra.mxu0 %vm1118_vm3, %v6112_v48  ;;  %5151 = vmatprep.subr.mxu1 %v2127_v62  ;;  %v2108_v48 = vld [vmem:[%s6642_s26 + $0x20] sm:$0xff]  ;;  %v1906_v62 = vpop.permute.xlu1 %1905 }
 0x229   : > { %5152 = vmatpush3.msra.mxu1 %v2111_v63  ;;  %5418 = vmatprep.subr.mxu0 %v5770_v2 }
 0x22a   : > { %5153 = vmatprep.subr.mxu1 %v2126_v0  ;;  %5420 = vmatprep.mubr.msk.f32.mxu0 %vm5771_vm2, %v5770_v2  ;;  %v1913_v0 = vpop.permute.xlu0 %1912 }
 0x22b   : > { %5154 = vmatpush3.msra.mxu1 %v2110_v1  ;;  %v1917_v1 = vstv %s1006_s2  ;;  %s2103_s2 = sld [smem:[#allocation3]] }
 0x22c   : > { %5155 = vmatprep.subr.mxu1 %v2125_v3 }
 0x22d   : > { %5156 = vmatpush3.msra.mxu1 %v2109_v4 }
 0x22e   : > { %5157 = vmatprep.subr.mxu1 %v2124_v6  ;;  %v1920_v6 = vld [vmem:[%s6644_s14] sm:$0x3]  ;;  %s6647_s14 = sld [smem:[#allocation20_spill]] }
 0x22f   : > { %5158 = vmatpush3.msra.mxu1 %v2108_v48  ;;  %v2028_v48 = vld [vmem:[%s6645_s28 + $0x78] sm:$0xff] }
 0x230   : > { %5159 = vmatprep.subr.mxu1 %v2123_v7 }
 0x231   : > { %5160 = vmatpush3.msra.mxu1 %v2107_v8  ;;  %v2027_v8 = vld [vmem:[%s6645_s28 + $0x70] sm:$0xff] }
 0x232   : > { %5161 = vmatprep.subr.mxu1 %v2122_v9  ;;  %v2026_v9 = vld [vmem:[%s6645_s28 + $0x68] sm:$0xff] }
 0x233   : > { %5162 = vmatpush3.msra.mxu1 %v2106_v14  ;;  %v2025_v14 = vld [vmem:[%s6645_s28 + $0x60] sm:$0xff] }
 0x234   : > { %5163 = vmatprep.subr.mxu1 %v2121_v15 }
 0x235   : > { %5164 = vmatpush3.msra.mxu1 %v2105_v16  ;;  %v2024_v16 = vld [vmem:[%s6645_s28 + $0x58] sm:$0xff] }
 0x236   : > { %5165 = vmatprep.subr.mxu1 %v2120_v17  ;;  %v2023_v17 = vld [vmem:[%s6645_s28 + $0x50] sm:$0xff] }
 0x237   : > { %5166 = vmatpush3.msra.mxu1 %v2104_v18 }
 0x238   : > { %2201 = vmatmul.mubr.f32.vlgmr.msra.gmra.mxu1 %v1004_v13  ;;  %5472 = vmatprep.subr.mxu1 %v5770_v2 }
 0x239   : > { %5476 = vmatprep.mubr.msk.f32.mxu1 %vm5771_vm2, %v5770_v2  ;;  %5473 = vmatpush3.msra.mxu1 %v4928_v19  ;;  %v2022_v19 = vld [vmem:[%s6645_s28 + $0x48] sm:$0xff] }
 0x23a   : > { %5474 = vmatprep.subr.mxu1 %v5770_v2 }
 0x23b   : > { %5475 = vmatpush3.msra.mxu1 %v4927_v20 }
 0x23c   : > { %5486 = vmatprep.subr.mxu1 %v5770_v2 }
 0x2a1   : > { %v1188_v21 = vpop.f32.mrf.mxu0  ;;  %v1363_v22 = vpop.f32.mrf.mxu1 }
 0x2a2   : > { %v1197_v35 = vmul.f32 %v1195_v31, %v1188_v21  ;;  %v1372_v42 = vmul.f32 %v1370_v37, %v1363_v22  ;;  %v4936_v21 = vld [vmem:[%s6643_s24 + $0x98] sm:$0xff]  ;;  %v2021_v22 = vld [vmem:[%s6645_s28 + $0x40] sm:$0xff] }
 0x2a3   : > { %v5265_v23 = vpop.f32.mrf.mxu0  ;;  %v5303_v24 = vpop.f32.mrf.mxu1  ;;  %v4968_v31 = vld [vmem:[%s6643_s24 + $0x118] sm:$0xff] }
 0x2a4   : > { %v4935_v23 = vld [vmem:[%s6643_s24 + $0x90] sm:$0xff]  ;;  %v2020_v24 = vld [vmem:[%s6645_s28 + $0x38] sm:$0xff] }
 0x2a5   : > { %v4992_v37 = vld [vmem:[%s6643_s24 + $0x178] sm:$0xff] }
 0x2b2   : > { %v1275_v25 = vpop.f32.mrf.mxu0 }
 0x2b3   : > { %v1539_v10 = vpop.f32.mrf.mxu1  ;;  %v1284_v33 = vmul.f32 %v1282_v32, %v1275_v25  ;;  %v4944_v25 = vld [vmem:[%s6643_s24 + $0xb8] sm:$0xff]  ;;  %v4967_v32 = vld [vmem:[%s6643_s24 + $0x110] sm:$0xff] }
 0x2b4   : > { %v5284_v13 = vpop.f32.mrf.mxu0  ;;  %v1548_v49 = vmul.f32 %v1546_v45, %v1539_v10  ;;  %v2019_v10 = vld [vmem:[%s6645_s28 + $0x30] sm:$0xff] }
 0x2b5   : > { %v5341_v26 = vpop.f32.mrf.mxu1  ;;  %v1285_v39 = vadd.f32 %v1284_v33, %v1197_v35  ;;  %v4943_v13 = vld [vmem:[%s6643_s24 + $0xb0] sm:$0xff]  ;;  %v4976_v33 = vld [vmem:[%s6643_s24 + $0x138] sm:$0xff] }
 0x2b6   : > { %v2018_v26 = vld [vmem:[%s6645_s28 + $0x28] sm:$0xff]  ;;  %v4984_v35 = vld [vmem:[%s6643_s24 + $0x158] sm:$0xff] }
 0x2b7   : > { %v1373_v44 = vadd.f32 %v1372_v42, %v1285_v39  ;;  %v2017_v39 = vld [vmem:[%s6645_s28 + $0x20] sm:$0xff]  ;;  %v2014_v42 = vld [vmem:[%s6645_s28 + $0x8] sm:$0xff] }
 0x2c4   : > { %v1451_v27 = vpop.f32.mrf.mxu0 }
 0x2c5   : > { %v1715_v28 = vpop.f32.mrf.mxu1  ;;  %v1460_v43 = vmul.f32 %v1458_v41, %v1451_v27  ;;  %v4952_v27 = vld [vmem:[%s6643_s24 + $0xd8] sm:$0xff]  ;;  %v2015_v41 = vld [vmem:[%s6645_s28 + $0x10] sm:$0xff] }
 0x2c6   : > { %v5322_v29 = vpop.f32.mrf.mxu0  ;;  %v1724_v52 = vmul.f32 %v1722_v12, %v1715_v28  ;;  %v4951_v28 = vld [vmem:[%s6643_s24 + $0xd0] sm:$0xff]  ;;  %v2207_v12 = vld [vmem:[%s6643_s24] sm:$0xff] }
 0x2c7   : > { %v5379_v30 = vpop.f32.mrf.mxu1  ;;  %v1461_v46 = vadd.f32 %v1460_v43, %v1373_v44  ;;  %v4960_v29 = vld [vmem:[%s6643_s24 + $0xf8] sm:$0xff]  ;;  %v2013_v43 = vld [vmem:[%s6645_s28] sm:$0xff]  ;;  %v2003_v44 = vpop.permute.xlu1 %2002 }
 0x2c8   : > { %v4959_v30 = vld [vmem:[%s6643_s24 + $0xf0] sm:$0xff] }
 0x2c9   : > { %v1549_v11 = vadd.f32 %v1548_v49, %v1461_v46 }
 0x2d6   : > { %v1627_v34 = vpop.f32.mrf.mxu0 }
 0x2d7   : > { %v1891_v36 = vpop.f32.mrf.mxu1  ;;  %v1636_v50 = vmul.f32 %v1634_v47, %v1627_v34  ;;  %v4975_v34 = vld [vmem:[%s6643_s24 + $0x130] sm:$0xff]  ;;  %v2010_v47 = vpop.permute.xlu0 %2009 }
 0x2d8   : > { %v5360_v38 = vpop.f32.mrf.mxu0  ;;  %v1900_v59 = vmul.f32 %v1898_v57, %v1891_v36  ;;  %v4983_v36 = vld [vmem:[%s6643_s24 + $0x150] sm:$0xff] }
 0x2d9   : > { %v5417_v40 = vpop.f32.mrf.mxu1  ;;  %v1637_v51 = vadd.f32 %v1636_v50, %v1549_v11  ;;  %v4991_v38 = vld [vmem:[%s6643_s24 + $0x170] sm:$0xff]  ;;  %v2208_v11 = vld [vmem:[%s6643_s24 + $0x8] sm:$0xff] }
 0x2da   : > { %v2016_v40 = vld [vmem:[%s6645_s28 + $0x18] sm:$0xff] }
 0x2db   : > { %v1725_v55 = vadd.f32 %v1724_v52, %v1637_v51  ;;  %v4904_v52 = vld [vmem:[%s6643_s24 + $0x18] sm:$0xff] }
 0x2e8   : > { %v1803_v54 = vpop.f32.mrf.mxu0 }
 0x2e9   : > { %v1812_v56 = vmul.f32 %v1810_v53, %v1803_v54  ;;  %v4903_v54 = vld [vmem:[%s6643_s24 + $0x10] sm:$0xff] }
 0x2ea   : > { %v5398_v58 = vpop.f32.mrf.mxu0 }
 0x2eb   : > { %v1813_v60 = vadd.f32 %v1812_v56, %v1725_v55  ;;  %v4908_v56 = vld [vmem:[%s6643_s24 + $0x28] sm:$0xff]  ;;  %v4907_v58 = vld [vmem:[%s6643_s24 + $0x20] sm:$0xff] }
 0x2ed   : > { %v1901_v61 = vadd.f32 %v1900_v59, %v1813_v60  ;;  %v4912_v60 = vld [vmem:[%s6643_s24 + $0x38] sm:$0xff] }
 0x2ef   : > { %v1908_v63 = vmul.f32 %v1906_v62, %v1901_v61  ;;  %v4911_v62 = vld [vmem:[%s6643_s24 + $0x30] sm:$0xff] }
 0x2f1   : > { %v1915_v3 = vadd.f32 %v1913_v0, %v1908_v63  ;;  %v4916_v0 = vld [vmem:[%s6643_s24 + $0x48] sm:$0xff] }
 0x2f3   : > { %vm1916_vm4 = vcmp.ge.f32.partialorder %v1915_v3, 0.0  ;;  %v1918_v4 = vmul.f32 %v1917_v1, %v1915_v3 }
 0x2f5   : > { %v1919_v7 = vsel %vm1916_vm4, %v1915_v3, %v1918_v4  ;;  %v4915_v3 = vld [vmem:[%s6643_s24 + $0x40] sm:$0xff] }
 0x2f6   : > { %5419 = vmatpush3.msk.msra.mxu0 %vm1925_vm5, %v1919_v7  ;;  %v4919_v7 = vld [vmem:[%s6643_s24 + $0x50] sm:$0xff] }
 0x2f7   : > { %5421 = vmatmul.mubr.msk.f32.vlgmr.msra.gmra.mxu0 %vm1921_vm6, %v1920_v6  ;;  %2048 = vmatprep.subr.mxu0 %v2028_v48  ;;  %v4920_v6 = vld [vmem:[%s6643_s24 + $0x58] sm:$0xff] }
 0x2f8   : > { %v5167_v15 = vpop.f32.mrf.mxu1  ;;  %2049 = vmatpush1.msra.mxu0 %v2027_v8  ;;  %2096 = vmatprep.mubr.f32.mxu0 %v5770_v2 }
 0x2f9   : > { %2050 = vmatprep.subr.mxu0 %v2026_v9  ;;  %v4924_v9 = vld [vmem:[%s6643_s24 + $0x68] sm:$0xff] }
 0x2fa   : > { %v5168_v18 = vpop.f32.mrf.mxu1  ;;  %2051 = vmatpush1.msra.mxu0 %v2025_v14 }
 0x2fb   : > { %v6313_v20 = vadd.f32 %v5168_v18, %v5167_v15  ;;  %2052 = vmatprep.subr.mxu0 %v2024_v16  ;;  %v4923_v15 = vld [vmem:[%s6643_s24 + $0x60] sm:$0xff] }
 0x2fc   : > { %2053 = vmatpush1.msra.mxu0 %v2023_v17  ;;  %v4932_v17 = vld [vmem:[%s6643_s24 + $0x88] sm:$0xff] }
 0x2fd   : > { %5477 = vmatmul.mubr.msk.f32.vlgmr.msra.gmra.mxu1 %vm2209_vm7, %v6313_v20  ;;  %2054 = vmatprep.subr.mxu0 %v2022_v19  ;;  %v4931_v19 = vld [vmem:[%s6643_s24 + $0x80] sm:$0xff] }
 0x2fe   : > { %5487 = vmatpush3.msra.mxu1 %v4936_v21  ;;  %5490 = vmatprep.mubr.msk.f32.mxu1 %vm5771_vm2, %v5770_v2 }
 0x2ff   : > { %5488 = vmatprep.subr.mxu1 %v5770_v2  ;;  %2055 = vmatpush1.msra.mxu0 %v2021_v22  ;;  %v4940_v22 = vld [vmem:[%s6643_s24 + $0xa8] sm:$0xff] }
 0x300   : > { %5489 = vmatpush3.msra.mxu1 %v4935_v23  ;;  %2056 = vmatprep.subr.mxu0 %v2020_v24  ;;  %v4939_v24 = vld [vmem:[%s6643_s24 + $0xa0] sm:$0xff] }
 0x301   : > { %5491 = vmatmul.mubr.msk.f32.vlgmr.msra.gmra.mxu1 %vm2209_vm7, %v6313_v20  ;;  %5500 = vmatprep.subr.mxu1 %v5770_v2 }
 0x302   : > { %5501 = vmatpush3.msra.mxu1 %v4944_v25  ;;  %5504 = vmatprep.mubr.msk.f32.mxu1 %vm5771_vm2, %v5770_v2 }
 0x303   : > { %5502 = vmatprep.subr.mxu1 %v5770_v2  ;;  %2057 = vmatpush1.msra.mxu0 %v2019_v10  ;;  %v4948_v10 = vld [vmem:[%s6643_s24 + $0xc8] sm:$0xff] }
 0x304   : > { %5503 = vmatpush3.msra.mxu1 %v4943_v13  ;;  %2058 = vmatprep.subr.mxu0 %v2018_v26  ;;  %v4947_v26 = vld [vmem:[%s6643_s24 + $0xc0] sm:$0xff] }
 0x305   : > { %5505 = vmatmul.mubr.msk.f32.vlgmr.msra.gmra.mxu1 %vm2209_vm7, %v6313_v20  ;;  %5514 = vmatprep.subr.mxu1 %v5770_v2 }
 0x306   : > { %5515 = vmatpush3.msra.mxu1 %v4952_v27  ;;  %5518 = vmatprep.mubr.msk.f32.mxu1 %vm5771_vm2, %v5770_v2  ;;  %v4956_v27 = vld [vmem:[%s6643_s24 + $0xe8] sm:$0xff] }
 0x307   : > { %5516 = vmatprep.subr.mxu1 %v5770_v2  ;;  %2059 = vmatpush1.msra.mxu0 %v2017_v39  ;;  %v4369_v39 = vld [vmem:[%s6646_s16 + $0x18] sm:$0xff] }
 0x308   : > { %5517 = vmatpush3.msra.mxu1 %v4951_v28  ;;  %2060 = vmatprep.subr.mxu0 %v2016_v40  ;;  %v4955_v28 = vld [vmem:[%s6643_s24 + $0xe0] sm:$0xff]  ;;  %v4368_v40 = vld [vmem:[%s6646_s16 + $0x10] sm:$0xff] }
 0x309   : > { %5519 = vmatmul.mubr.msk.f32.vlgmr.msra.gmra.mxu1 %vm2209_vm7, %v6313_v20  ;;  %5528 = vmatprep.subr.mxu1 %v5770_v2 }
 0x30a   : > { %5529 = vmatpush3.msra.mxu1 %v4960_v29  ;;  %5532 = vmatprep.mubr.msk.f32.mxu1 %vm5771_vm2, %v5770_v2  ;;  %v4964_v29 = vld [vmem:[%s6643_s24 + $0x108] sm:$0xff] }
 0x30b   : > { %5530 = vmatprep.subr.mxu1 %v5770_v2  ;;  %2061 = vmatpush1.msra.mxu0 %v2015_v41  ;;  %v4367_v41 = vld [vmem:[%s6646_s16 + $0x8] sm:$0xff] }
 0x30c   : > { %5531 = vmatpush3.msra.mxu1 %v4959_v30  ;;  %2062 = vmatprep.subr.mxu0 %v2014_v42  ;;  %v4963_v30 = vld [vmem:[%s6643_s24 + $0x100] sm:$0xff] }
 0x30d   : > { %5533 = vmatmul.mubr.msk.f32.vlgmr.msra.gmra.mxu1 %vm2209_vm7, %v6313_v20  ;;  %5542 = vmatprep.subr.mxu1 %v5770_v2  ;;  %v4366_v42 = vld [vmem:[%s6646_s16] sm:$0xff]  ;;  %s5684_s16 = scalar_lea.vmem %s5683_s13, 256 }
 0x30e   : > { %5543 = vmatpush3.msra.mxu1 %v4968_v31  ;;  %5546 = vmatprep.mubr.msk.f32.mxu1 %vm5771_vm2, %v5770_v2  ;;  %v4972_v31 = vld [vmem:[%s6643_s24 + $0x128] sm:$0xff] }
 0x30f   : > { %5544 = vmatprep.subr.mxu1 %v5770_v2  ;;  %2063 = vmatpush1.msra.mxu0 %v2013_v43  ;;  %v2286_v43 = vpop.permute.xlu1 %2285 }
 0x310   : > { %5545 = vmatpush3.msra.mxu1 %v4967_v32  ;;  %5423 = vmatprep.subr.mxu0 %v5770_v2  ;;  %v4971_v32 = vld [vmem:[%s6643_s24 + $0x120] sm:$0xff] }
 0x311   : > { %5547 = vmatmul.mubr.msk.f32.vlgmr.msra.gmra.mxu1 %vm2209_vm7, %v6313_v20  ;;  %5556 = vmatprep.subr.mxu1 %v5770_v2 }
 0x312   : > { %5557 = vmatpush3.msra.mxu1 %v4976_v33  ;;  %5560 = vmatprep.mubr.msk.f32.mxu1 %vm5771_vm2, %v5770_v2  ;;  %v4980_v33 = vld [vmem:[%s6643_s24 + $0x148] sm:$0xff] }
 0x313   : > { %5558 = vmatprep.subr.mxu1 %v5770_v2 }
 0x314   : > { %5559 = vmatpush3.msra.mxu1 %v4975_v34  ;;  %v4979_v34 = vld [vmem:[%s6643_s24 + $0x140] sm:$0xff] }
 0x315   : > { %5561 = vmatmul.mubr.msk.f32.vlgmr.msra.gmra.mxu1 %vm2209_vm7, %v6313_v20  ;;  %5570 = vmatprep.subr.mxu1 %v5770_v2 }
 0x316   : > { %5571 = vmatpush3.msra.mxu1 %v4984_v35  ;;  %5574 = vmatprep.mubr.msk.f32.mxu1 %vm5771_vm2, %v5770_v2  ;;  %v4988_v35 = vld [vmem:[%s6643_s24 + $0x168] sm:$0xff] }
 0x317   : > { %5572 = vmatprep.subr.mxu1 %v5770_v2 }
 0x318   : > { %5573 = vmatpush3.msra.mxu1 %v4983_v36  ;;  %v4987_v36 = vld [vmem:[%s6643_s24 + $0x160] sm:$0xff] }
 0x319   : > { %5575 = vmatmul.mubr.msk.f32.vlgmr.msra.gmra.mxu1 %vm2209_vm7, %v6313_v20  ;;  %5584 = vmatprep.subr.mxu1 %v5770_v2 }
 0x31a   : > { %5585 = vmatpush3.msra.mxu1 %v4992_v37  ;;  %5588 = vmatprep.mubr.msk.f32.mxu1 %vm5771_vm2, %v5770_v2  ;;  %v4996_v37 = vld [vmem:[%s6643_s24 + $0x188] sm:$0xff] }
 0x31b   : > { %5586 = vmatprep.subr.mxu1 %v5770_v2 }
 0x31c   : > { %5587 = vmatpush3.msra.mxu1 %v4991_v38  ;;  %v4995_v38 = vld [vmem:[%s6643_s24 + $0x180] sm:$0xff] }
 0x31d   : > { %5589 = vmatmul.mubr.msk.f32.vlgmr.msra.gmra.mxu1 %vm2209_vm7, %v6313_v20  ;;  %5598 = vmatprep.subr.mxu1 %v5770_v2 }
 0x31e   : > { %5600 = vmatprep.mubr.msk.f32.mxu1 %vm5771_vm2, %v5770_v2 }
 0x3b7   : > { %v1995_v45 = vpop.f32.mrf.mxu0 }
 0x3b8   : > { %v2005_v46 = vmul.f32 %v2003_v44, %v1995_v45  ;;  %v2367_v44 = vpop.permute.xlu0 %2366  ;;  %v2449_v45 = vpop.permute.xlu1 %2448 }
 0x3b9   : > { %v5422_v49 = vpop.f32.mrf.mxu0 }
 0x3ba   : > { %v2012_v50 = vadd.f32 %v2010_v47, %v2005_v46 }
 0x3bc   : > { %4900 = vmatmul.mubr.msk.f32.vlgmr.msra.gmra.mxu0 %vm1118_vm3, %v2012_v50  ;;  %v2531_v47 = vpop.permute.xlu0 %2530  ;;  %v2613_v50 = vpop.permute.xlu1 %2612 }
 0x3bd   : > { %5424 = vmatpush3.msra.mxu0 %v2208_v11  ;;  %v6396_v51 = vpop.f32.mrf.mxu1  ;;  %5427 = vmatprep.mubr.msk.f32.mxu0 %vm5771_vm2, %v5770_v2 }
 0x3be   : > { %5425 = vmatprep.subr.mxu0 %v5770_v2 }
 0x3bf   : > { %5426 = vmatpush3.msra.mxu0 %v2207_v12  ;;  %v5478_v53 = vpop.f32.mrf.mxu1 }
 0x3c0   : > { %5428 = vmatmul.mubr.msk.f32.vlgmr.msra.gmra.mxu0 %vm2209_vm7, %v6313_v20  ;;  %5430 = vmatprep.subr.mxu0 %v5770_v2  ;;  %v2695_v12 = vpop.permute.xlu0 %2694  ;;  %v2777_v53 = vpop.permute.xlu1 %2776 }
 0x3c1   : > { %5431 = vmatpush3.msra.mxu0 %v4904_v52  ;;  %v6406_v55 = vpop.f32.mrf.mxu1  ;;  %5434 = vmatprep.mubr.msk.f32.mxu0 %vm5771_vm2, %v5770_v2 }
 0x3c2   : > { %5432 = vmatprep.subr.mxu0 %v5770_v2 }
 0x3c3   : > { %5433 = vmatpush3.msra.mxu0 %v4903_v54  ;;  %v5492_v57 = vpop.f32.mrf.mxu1 }
 0x3c4   : > { %5435 = vmatmul.mubr.msk.f32.vlgmr.msra.gmra.mxu0 %vm2209_vm7, %v6313_v20  ;;  %5437 = vmatprep.subr.mxu0 %v5770_v2  ;;  %v2859_v57 = vpop.permute.xlu0 %2858 }
 0x3c5   : > { %5438 = vmatpush3.msra.mxu0 %v4908_v56  ;;  %v6416_v59 = vpop.f32.mrf.mxu1  ;;  %5441 = vmatprep.mubr.msk.f32.mxu0 %vm5771_vm2, %v5770_v2 }
 0x3c6   : > { %5439 = vmatprep.subr.mxu0 %v5770_v2 }
 0x3c7   : > { %5440 = vmatpush3.msra.mxu0 %v4907_v58  ;;  %v5506_v61 = vpop.f32.mrf.mxu1 }
 0x3c8   : > { %5442 = vmatmul.mubr.msk.f32.vlgmr.msra.gmra.mxu0 %vm2209_vm7, %v6313_v20  ;;  %5444 = vmatprep.subr.mxu0 %v5770_v2 }
 0x3c9   : > { %5445 = vmatpush3.msra.mxu0 %v4912_v60  ;;  %v6426_v63 = vpop.f32.mrf.mxu1  ;;  %5448 = vmatprep.mubr.msk.f32.mxu0 %vm5771_vm2, %v5770_v2  ;;  %v2941_v60 = vpop.permute.xlu1 %2940 }
 0x3ca   : > { %5446 = vmatprep.subr.mxu0 %v5770_v2 }
 0x3cb   : > { %5447 = vmatpush3.msra.mxu0 %v4911_v62  ;;  %v5520_v1 = vpop.f32.mrf.mxu1 }
 0x3cc   : > { %5449 = vmatmul.mubr.msk.f32.vlgmr.msra.gmra.mxu0 %vm2209_vm7, %v6313_v20  ;;  %5451 = vmatprep.subr.mxu0 %v5770_v2 }
 0x3cd   : > { %5452 = vmatpush3.msra.mxu0 %v4916_v0  ;;  %v6436_v4 = vpop.f32.mrf.mxu1  ;;  %5455 = vmatprep.mubr.msk.f32.mxu0 %vm5771_vm2, %v5770_v2 }
 0x3ce   : > { %5453 = vmatprep.subr.mxu0 %v5770_v2 }
 0x3cf   : > { %5454 = vmatpush3.msra.mxu0 %v4915_v3  ;;  %v5534_v48 = vpop.f32.mrf.mxu1 }
 0x3d0   : > { %5456 = vmatmul.mubr.msk.f32.vlgmr.msra.gmra.mxu0 %vm2209_vm7, %v6313_v20  ;;  %5458 = vmatprep.subr.mxu0 %v5770_v2 }
 0x3d1   : > { %5459 = vmatpush3.msra.mxu0 %v4920_v6  ;;  %v6446_v8 = vpop.f32.mrf.mxu1  ;;  %5462 = vmatprep.mubr.msk.f32.mxu0 %vm5771_vm2, %v5770_v2  ;;  %v3023_v6 = vpop.permute.xlu0 %3022 }
 0x3d2   : > { %5460 = vmatprep.subr.mxu0 %v5770_v2 }
 0x3d3   : > { %5461 = vmatpush3.msra.mxu0 %v4919_v7  ;;  %v5548_v14 = vpop.f32.mrf.mxu1 }
 0x3d4   : > { %5463 = vmatmul.mubr.msk.f32.vlgmr.msra.gmra.mxu0 %vm2209_vm7, %v6313_v20  ;;  %5465 = vmatprep.subr.mxu0 %v5770_v2  ;;  %v3105_v14 = vpop.permute.xlu1 %3104 }
 0x3d5   : > { %5466 = vmatpush3.msra.mxu0 %v4924_v9  ;;  %v6456_v16 = vpop.f32.mrf.mxu1  ;;  %5469 = vmatprep.mubr.msk.f32.mxu0 %vm5771_vm2, %v5770_v2 }
 0x3d6   : > { %5467 = vmatprep.subr.mxu0 %v5770_v2 }
 0x3d7   : > { %5468 = vmatpush3.msra.mxu0 %v4923_v15  ;;  %v5562_v18 = vpop.f32.mrf.mxu1 }
 0x3d8   : > { %5470 = vmatmul.mubr.msk.f32.vlgmr.msra.gmra.mxu0 %vm2209_vm7, %v6313_v20  ;;  %5479 = vmatprep.subr.mxu0 %v5770_v2 }
 0x3d9   : > { %5480 = vmatpush3.msra.mxu0 %v4932_v17  ;;  %v6466_v21 = vpop.f32.mrf.mxu1  ;;  %5483 = vmatprep.mubr.msk.f32.mxu0 %vm5771_vm2, %v5770_v2 }
 0x3da   : > { %5481 = vmatprep.subr.mxu0 %v5770_v2 }
 0x3db   : > { %5482 = vmatpush3.msra.mxu0 %v4931_v19  ;;  %v5576_v23 = vpop.f32.mrf.mxu1 }
 0x3dc   : > { %5484 = vmatmul.mubr.msk.f32.vlgmr.msra.gmra.mxu0 %vm2209_vm7, %v6313_v20  ;;  %5493 = vmatprep.subr.mxu0 %v5770_v2 }
 0x3dd   : > { %5494 = vmatpush3.msra.mxu0 %v4940_v22  ;;  %v6476_v25 = vpop.f32.mrf.mxu1  ;;  %5497 = vmatprep.mubr.msk.f32.mxu0 %vm5771_vm2, %v5770_v2 }
 0x3de   : > { %5495 = vmatprep.subr.mxu0 %v5770_v2 }
 0x3df   : > { %5496 = vmatpush3.msra.mxu0 %v4939_v24  ;;  %v5590_v13 = vpop.f32.mrf.mxu1  ;;  %v3187_v24 = vpop.permute.xlu0 %3186 }
 0x3e0   : > { %5498 = vmatmul.mubr.msk.f32.vlgmr.msra.gmra.mxu0 %vm2209_vm7, %v6313_v20  ;;  %5507 = vmatprep.subr.mxu0 %v5770_v2 }
 0x3e1   : > { %5508 = vmatpush3.msra.mxu0 %v4948_v10  ;;  %5511 = vmatprep.mubr.msk.f32.mxu0 %vm5771_vm2, %v5770_v2 }
 0x3e2   : > { %5509 = vmatprep.subr.mxu0 %v5770_v2 }
 0x3e3   : > { %5510 = vmatpush3.msra.mxu0 %v4947_v26  ;;  %v3269_v26 = vpop.permute.xlu1 %3268 }
 0x3e4   : > { %5512 = vmatmul.mubr.msk.f32.vlgmr.msra.gmra.mxu0 %vm2209_vm7, %v6313_v20  ;;  %5521 = vmatprep.subr.mxu0 %v5770_v2 }
 0x3e5   : > { %5522 = vmatpush3.msra.mxu0 %v4956_v27  ;;  %5525 = vmatprep.mubr.msk.f32.mxu0 %vm5771_vm2, %v5770_v2 }
 0x3e6   : > { %5523 = vmatprep.subr.mxu0 %v5770_v2 }
 0x3e7   : > { %5524 = vmatpush3.msra.mxu0 %v4955_v28 }
 0x3e8   : > { %5526 = vmatmul.mubr.msk.f32.vlgmr.msra.gmra.mxu0 %vm2209_vm7, %v6313_v20  ;;  %5535 = vmatprep.subr.mxu0 %v5770_v2 }
 0x3e9   : > { %5536 = vmatpush3.msra.mxu0 %v4964_v29  ;;  %5539 = vmatprep.mubr.msk.f32.mxu0 %vm5771_vm2, %v5770_v2 }
 0x3ea   : > { %5537 = vmatprep.subr.mxu0 %v5770_v2 }
 0x3eb   : > { %5538 = vmatpush3.msra.mxu0 %v4963_v30 }
 0x3ec   : > { %5540 = vmatmul.mubr.msk.f32.vlgmr.msra.gmra.mxu0 %vm2209_vm7, %v6313_v20  ;;  %5549 = vmatprep.subr.mxu0 %v5770_v2 }
 0x3ed   : > { %5550 = vmatpush3.msra.mxu0 %v4972_v31  ;;  %5553 = vmatprep.mubr.msk.f32.mxu0 %vm5771_vm2, %v5770_v2  ;;  %v2861_v31 = vmul.f32 %v2859_v57, %v6396_v51 }
 0x3ee   : > { %5551 = vmatprep.subr.mxu0 %v5770_v2 }
 0x3ef   : > { %5552 = vmatpush3.msra.mxu0 %v4971_v32 }
 0x3f0   : > { %5554 = vmatmul.mubr.msk.f32.vlgmr.msra.gmra.mxu0 %vm2209_vm7, %v6313_v20  ;;  %5563 = vmatprep.subr.mxu0 %v5770_v2 }
 0x3f1   : > { %5564 = vmatpush3.msra.mxu0 %v4980_v33  ;;  %5567 = vmatprep.mubr.msk.f32.mxu0 %vm5771_vm2, %v5770_v2  ;;  %v3351_v33 = vpop.permute.xlu0 %3350 }
 0x3f2   : > { %5565 = vmatprep.subr.mxu0 %v5770_v2 }
 0x3f3   : > { %5566 = vmatpush3.msra.mxu0 %v4979_v34 }
 0x3f4   : > { %5568 = vmatmul.mubr.msk.f32.vlgmr.msra.gmra.mxu0 %vm2209_vm7, %v6313_v20  ;;  %5577 = vmatprep.subr.mxu0 %v5770_v2 }
 0x3f5   : > { %5578 = vmatpush3.msra.mxu0 %v4988_v35  ;;  %5581 = vmatprep.mubr.msk.f32.mxu0 %vm5771_vm2, %v5770_v2 }
 0x3f6   : > { %5579 = vmatprep.subr.mxu0 %v5770_v2 }
 0x3f7   : > { %5580 = vmatpush3.msra.mxu0 %v4987_v36 }
 0x3f8   : > { %5582 = vmatmul.mubr.msk.f32.vlgmr.msra.gmra.mxu0 %vm2209_vm7, %v6313_v20  ;;  %5591 = vmatprep.subr.mxu0 %v5770_v2 }
 0x3f9   : > { %5592 = vmatpush3.msra.mxu0 %v4996_v37  ;;  %5595 = vmatprep.mubr.msk.f32.mxu0 %vm5771_vm2, %v5770_v2  ;;  %v3433_v37 = vpop.permute.xlu1 %3432 }
 0x3fa   : > { %5593 = vmatprep.subr.mxu0 %v5770_v2 }
 0x3fb   : > { %5594 = vmatpush3.msra.mxu0 %v4995_v38 }
 0x3fc   : > { %5596 = vmatmul.mubr.msk.f32.vlgmr.msra.gmra.mxu0 %vm2209_vm7, %v6313_v20  ;;  %4401 = vmatprep.subr.mxu0 %v4369_v39  ;;  %v3025_v39 = vmul.f32 %v3023_v6, %v6406_v55 }
 0x3fd   : > { %4402 = vmatpush1.msra.mxu0 %v4368_v40  ;;  %4437 = vmatprep.mubr.f32.mxu0 %v5770_v2 }
 0x3fe   : > { %4403 = vmatprep.subr.mxu0 %v4367_v41 }
 0x3ff   : > { %4404 = vmatpush1.msra.mxu0 %v4366_v42 }
 0x47c   : > { %v6544_v46 = vpop.f32.mrf.mxu0 }
 0x47e   : > { %v2100_v49 = vpop.f32.mrf.mxu0 }
 0x47f   : > { %5004 = vmatprep.subr.msk.mxu0 %vm1925_vm5, %v2100_v49 }
 0x480   : > { %v2279_v11 = vpop.f32.mrf.mxu0 }
 0x481   : > { %v2288_v1 = vmul.f32 %v2286_v43, %v2279_v11 }
 0x482   : > { %v5429_v20 = vpop.f32.mrf.mxu0 }
 0x484   : > { %v2360_v52 = vpop.f32.mrf.mxu0 }
 0x485   : > { %v2369_v62 = vmul.f32 %v2367_v44, %v2360_v52  ;;  %v3515_v44 = vpop.permute.xlu0 %3514  ;;  %v3353_v52 = vmul.f32 %v3351_v33, %v6426_v63 }
 0x486   : > { %v5436_v54 = vpop.f32.mrf.mxu0 }
 0x487   : > { %v2370_v7 = vadd.f32 %v2369_v62, %v2288_v1 }
 0x488   : > { %v2442_v56 = vpop.f32.mrf.mxu0 }
 0x489   : > { %v2451_v3 = vmul.f32 %v2449_v45, %v2442_v56  ;;  %v3679_v54 = vpop.permute.xlu0 %3678 }
 0x48a   : > { %v5443_v58 = vpop.f32.mrf.mxu0 }
 0x48b   : > { %v2452_v17 = vadd.f32 %v2451_v3, %v2370_v7 }
 0x48c   : > { %v2524_v61 = vpop.f32.mrf.mxu0 }
 0x48d   : > { %v2533_v9 = vmul.f32 %v2531_v47, %v2524_v61  ;;  %v3189_v47 = vmul.f32 %v3187_v24, %v6416_v59  ;;  %v3517_v61 = vmul.f32 %v3515_v44, %v6436_v4  ;;  %v3843_v3 = vpop.permute.xlu0 %3842  ;;  %v4275_v44 = vld [vmem:[%s6647_s14] sm:$0x3] }
 0x48e   : > { %v5450_v0 = vpop.f32.mrf.mxu0 }
 0x48f   : > { %v2534_v22 = vadd.f32 %v2533_v9, %v2452_v17 }
 0x490   : > { %v2606_v48 = vpop.f32.mrf.mxu0 }
 0x491   : > { %v2615_v18 = vmul.f32 %v2613_v50, %v2606_v48  ;;  %v3597_v50 = vpop.permute.xlu1 %3596  ;;  %v3681_v48 = vmul.f32 %v3679_v54, %v6446_v8  ;;  %v5677_v54 = vld [vmem:[%s5979_s1] sm:$0xff]  ;;  %s5016_s1 = sshll.u32 %s5946_s0, 7 }
 0x492   : > { %v5457_v15 = vpop.f32.mrf.mxu0  ;;  %s4717_s8 = scalar_lea.hbm %s5922_s7, %s5016_s1 }
 0x493   : > { %v2616_v13 = vadd.f32 %v2615_v18, %v2534_v22  ;;  %v3845_v18 = vmul.f32 %v3843_v3, %v6456_v16  ;;  %v4007_v22 = vpop.permute.xlu0 %4006 }
 0x494   : > { %v2688_v19 = vpop.f32.mrf.mxu0 }
 0x495   : > { %v2697_v23 = vmul.f32 %v2695_v12, %v2688_v19  ;;  %v3761_v58 = vpop.permute.xlu1 %3760 }
 0x496   : > { %v5464_v10 = vpop.f32.mrf.mxu0 }
 0x497   : > { %v2698_v28 = vadd.f32 %v2697_v23, %v2616_v13 }
 0x498   : > { %v2770_v27 = vpop.f32.mrf.mxu0 }
 0x499   : > { %v2779_v29 = vmul.f32 %v2777_v53, %v2770_v27  ;;  %v3925_v9 = vpop.permute.xlu1 %3924 }
 0x49a   : > { %v5471_v30 = vpop.f32.mrf.mxu0 }
 0x49b   : > { %v2780_v32 = vadd.f32 %v2779_v29, %v2698_v28  ;;  %v4171_v30 = vpop.permute.xlu0 %4170 }
 0x49c   : > { %v2934_v34 = vpop.f32.mrf.mxu0 }
 0x49d   : > { %v2862_v35 = vadd.f32 %v2861_v31, %v2780_v32  ;;  %v2943_v36 = vmul.f32 %v2941_v60, %v2934_v34  ;;  %v4089_v10 = vpop.permute.xlu1 %4088  ;;  %v4173_v32 = vmul.f32 %v4171_v30, %v6476_v25 }
 0x49e   : > { %v5485_v38 = vpop.f32.mrf.mxu0 }
 0x49f   : > { %v2944_v40 = vadd.f32 %v2943_v36, %v2862_v35 }
 0x4a0   : > { %v3098_v41 = vpop.f32.mrf.mxu0 }
 0x4a1   : > { %v3026_v42 = vadd.f32 %v3025_v39, %v2944_v40  ;;  %v3107_v43 = vmul.f32 %v3105_v14, %v3098_v41  ;;  %v4253_v33 = vpop.permute.xlu1 %4252  ;;  %v4261_v39 = vpop.permute.xlu0 %4260  ;;  %v4272_v41 = vstv %s2103_s2 }
 0x4a2   : > { %v5499_v45 = vpop.f32.mrf.mxu0 }
 0x4a3   : > { %v3108_v49 = vadd.f32 %v3107_v43, %v3026_v42 }
 0x4a4   : > { %v3262_v51 = vpop.f32.mrf.mxu0 }
 0x4a5   : > { %v3190_v11 = vadd.f32 %v3189_v47, %v3108_v49  ;;  %v3271_v20 = vmul.f32 %v3269_v26, %v3262_v51  ;;  %v4009_v26 = vmul.f32 %v4007_v22, %v6466_v21  ;;  %v4268_v21 = vpop.permute.xlu1 %4267  ;;  %v4356_v25 = vpop.permute.xlu0 %4355 }
 0x4a6   : > { %v5513_v12 = vpop.f32.mrf.mxu0 }
 0x4a7   : > { %v3272_v53 = vadd.f32 %v3271_v20, %v3190_v11  ;;  %v4444_v20 = vld [vmem:[%s6648_s4] sm:$0xf]  ;;  %s4693_s4 = sld [smem:[#allocation4]] }
 0x4a8   : > { %v3426_v56 = vpop.f32.mrf.mxu0 }
 0x4a9   : > { %v3354_v55 = vadd.f32 %v3353_v52, %v3272_v53  ;;  %v3435_v57 = vmul.f32 %v3433_v37, %v3426_v56  ;;  %v4445_v53 = vld [vmem:[%s6649_s5] sm:$0xf]  ;;  %s896_s5 = sand.u32 1, %s5730_s10  }
 0x4aa   : > { %v5527_v60 = vpop.f32.mrf.mxu0  ;;  %s4811_s2 = sshll.u32 %s896_s5, 3  ;;  %s4705_s9 = scalar_lea.sflag [#allocation6], %s896_s5 }
 0x4ab   : > { %v3436_v62 = vadd.f32 %v3435_v57, %v3354_v55  ;;  %s898_s14 = scalar_lea.vmem [#allocation5], %s4811_s2 }
 0x4ac   : > { %v3590_v0 = vpop.f32.mrf.mxu0 }
 0x4ad   : > { %v3518_v59 = vadd.f32 %v3517_v61, %v3436_v62  ;;  %v3599_v1 = vmul.f32 %v3597_v50, %v3590_v0  ;;  %v4363_v50 = vpop.permute.xlu1 %4362 }
 0x4ae   : > { %v5541_v6 = vpop.f32.mrf.mxu0 }
 0x4af   : > { %v3600_v7 = vadd.f32 %v3599_v1, %v3518_v59  ;;  %v4694_v59 = vstv %s4693_s4 }
 0x4b0   : > { %v3754_v63 = vpop.f32.mrf.mxu0 }
 0x4b1   : > { %v3682_v14 = vadd.f32 %v3681_v48, %v3600_v7  ;;  %v3763_v15 = vmul.f32 %v3761_v58, %v3754_v63 }
 0x4b2   : > { %v5555_v17 = vpop.f32.mrf.mxu0 }
 0x4b3   : > { %v3764_v19 = vadd.f32 %v3763_v15, %v3682_v14 }
 0x4b4   : > { %v3918_v23 = vpop.f32.mrf.mxu0 }
 0x4b5   : > { %v3846_v4 = vadd.f32 %v3845_v18, %v3764_v19  ;;  %v3927_v24 = vmul.f32 %v3925_v9, %v3918_v23 }
 0x4b6   : > { %v5569_v13 = vpop.f32.mrf.mxu0 }
 0x4b7   : > { %v3928_v27 = vadd.f32 %v3927_v24, %v3846_v4 }
 0x4b8   : > { %v4082_v28 = vpop.f32.mrf.mxu0 }
 0x4b9   : > { %v4010_v8 = vadd.f32 %v4009_v26, %v3928_v27  ;;  %v4091_v29 = vmul.f32 %v4089_v10, %v4082_v28 }
 0x4ba   : > { %v5583_v31 = vpop.f32.mrf.mxu0 }
 0x4bb   : > { %v4092_v16 = vadd.f32 %v4091_v29, %v4010_v8 }
 0x4bc   : > { %v4246_v34 = vpop.f32.mrf.mxu0 }
 0x4bd   : > { %v4174_v35 = vadd.f32 %v4173_v32, %v4092_v16  ;;  %v4255_v36 = vmul.f32 %v4253_v33, %v4246_v34 }
 0x4be   : > { %v5597_v37 = vpop.f32.mrf.mxu0 }
 0x4bf   : > { %v4256_v38 = vadd.f32 %v4255_v36, %v4174_v35 }
 0x4c1   : > { %v4263_v40 = vmul.f32 %v4261_v39, %v4256_v38 }
 0x4c3   : > { %v4270_v42 = vadd.f32 %v4268_v21, %v4263_v40 }
 0x4c5   : > { %vm4271_vm8 = vcmp.ge.f32.partialorder %v4270_v42, 0.0  ;;  %v4273_v43 = vmul.f32 %v4272_v41, %v4270_v42 }
 0x4c7   : > { %v4274_v45 = vsel %vm4271_vm8, %v4270_v42, %v4273_v43 }
 0x4c8   : > { %5599 = vmatpush3.msk.msra.mxu1 %vm1925_vm5, %v4274_v45 }
 0x4c9   : > { %5601 = vmatmul.mubr.msk.f32.vlgmr.msra.gmra.mxu1 %vm1921_vm6, %v4275_v44 }
 0x4ca   : > { %4519 = vmatprep.mubr.f32.mxu1 %v5770_v2 }
 0x589   : > { %v4348_v47 = vpop.f32.mrf.mxu1 }
 0x58a   : > { %v4358_v49 = vmul.f32 %v4356_v25, %v4348_v47 }
 0x58b   : > { %v5602_v51 = vpop.f32.mrf.mxu1 }
 0x58c   : > { %v4365_v11 = vadd.f32 %v4363_v50, %v4358_v49 }
 0x58e   : > { %5000 = vmatmul.mubr.msk.f32.vlgmr.msra.gmra.mxu0 %vm2209_vm7, %v4365_v11 }
 0x58f   : > { %5005 = vmatpush1.msk.msra.mxu0 %vm1925_vm5, %v6544_v46  ;;  %4599 = vmatprep.mubr.f32.mxu0 %v5770_v2  ;;  %v4606_v46 = vld [vmem:[%s6650_s3] sm:$0xf]  ;;  %s4719_s3 = sshll.u32 %s898_s14, 4  ;;  %s4720_s3 = int_to_ptr.vmem [resolvable:$true] %s4719_s3 }
 0x590   : > { %s5678_s4 = scalar_lea.vmem %s4720_s3, 128  ;;  %p5685_p0 = scmp.lt.s32.totalorder %s4720_s3, %s5683_s13 }
 0x591   : > { %p5679_p11 = scmp.ne.s32.totalorder %s4720_s3, %s5678_s4  ;;  %p5686_p1 = scmp.lt.s32.totalorder %s5684_s16, %s5678_s4 }
 0x592   : > { %5006 = vmatmul.mubr.msk.f32.vlgmr.msra.gmra.mxu0 %vm1921_vm6, %v4444_v20 }
 0x593   : > { %p5680_p12 = pnand %p5679_p11, %p5963_p5  ;;  %p5687_p2 = por %p5686_p1, %p5685_p0 }
 0x595   : > { %p5681_p13 = pneg %p5680_p12 }
 0x597   : > { %p5688_p3 = pnand %p5687_p2, %p5681_p13 }
 0x64e   : > { %v4439_v12 = vpop.f32.mrf.mxu0 }
 0x650   : > { %v4441_v52 = vpop.f32.mrf.mxu0 }
 0x651   : > { %5001 = vmatprep.subr.msk.mxu1 %vm1925_vm5, %v4441_v52 }
 0x652   : > { %5002 = vmatpush1.msk.msra.mxu1 %vm1925_vm5, %v4439_v12  ;;  %v4601_v56 = vpop.f32.mrf.mxu0 }
 0x653   : > { %5003 = vmatmul.mubr.msk.f32.vlgmr.msra.gmra.mxu1 %vm1921_vm6, %v4445_v53  ;;  %5007 = vmatprep.subr.msk.mxu1 %vm912_vm0, %v5982_v5  ;;  %v4687_v5 = vpop.permute.xlu0 %4686 }
 0x654   : > { %5008 = vmatpush1.msk.msra.mxu1 %vm912_vm0, %v5677_v54  ;;  %4674 = vmatprep.mubr.f32.mxu1 %v5770_v2  ;;  %v4603_v58 = vpop.f32.mrf.mxu0 }
 0x657   : > { %5009 = vmatmul.mubr.msk.f32.vlgmr.msra.gmra.mxu1 %vm908_vm1, %v4606_v46 }
 0x713   : > { %v4521_v55 = vpop.f32.mrf.mxu1 }
 0x714   : > { %v4602_v60 = vadd.f32 %v4601_v56, %v4521_v55 }
 0x715   : > { %v4523_v57 = vpop.f32.mrf.mxu1 }
 0x716   : > { %v4604_v62 = vadd.f32 %v4603_v58, %v4523_v57 }
 0x717   : > { %v4676_v61 = vpop.f32.mrf.mxu1 }
 0x718   : > { %v4681_v0 = vadd.f32 %v4676_v61, %v4602_v60 }
 0x719   : > { %v4678_v1 = vpop.f32.mrf.mxu1 }
 0x71a   : > { %v4689_v2 = vadd.f32 %v4687_v5, %v4681_v0  ;;  %v4682_v3 = vadd.f32 %v4678_v1, %v4604_v62 }
 0x71c   : > { %v4695_v6 = vmul.f32 %v4694_v59, %v4689_v2  ;;  %v4690_v48 = vadd.f32 %v4687_v5, %v4682_v3  ;;  %vm4691_vm9 = vcmp.ge.f32.partialorder %v4689_v2, 0.0 }
 0x71e   : > { %vm4692_vm10 = vcmp.ge.f32.partialorder %v4690_v48, 0.0  ;;  %v4696_v7 = vmul.f32 %v4694_v59, %v4690_v48  ;;  %v4697_v9 = vsel %vm4691_vm9, %v4689_v2, %v4695_v6 }
 0x720   : > { %v4698_v63 = vsel %vm4692_vm10, %v4690_v48, %v4696_v7 }
 0x721   : > { %v4701_v14 = vcombine.low %v4697_v9, %v4698_v63 }
 0x723   : > { %4703 = vst [vmem:[%s898_s14] sm:$0xff] %v4701_v14 }
 0x724   : > { %5691 = shalt.err (!%p5688_p3)
}
 0x725   : > { %s5692_s0 = scalar_lea.hbm %s4717_s8, 128  ;;  %s5696_s5 = scalar_lea.hbm %s5922_s7, 256 }
 0x726   : > { %p5693_p4 = scmp.ne.s32.totalorder %s4717_s8, %s5692_s0  ;;  %p5697_p9 = scmp.lt.s32.totalorder %s4717_s8, %s5922_s7 }
 0x727   : > { %p5698_p10 = scmp.lt.s32.totalorder %s5696_s5, %s5692_s0 }
 0x728   : > { %p5694_p7 = pnand %p5693_p4, %p5963_p5 }
 0x729   : > { %p5699_p11 = por %p5698_p10, %p5697_p9 }
 0x72a   : > { %p5695_p8 = pneg %p5694_p7 }
 0x72c   : > { %p5700_p12 = pnand %p5699_p11, %p5695_p8 }
 0x72e   : > { %5703 = shalt.err (!%p5700_p12)
}
 0x72f   : > { %5603 = dma.vmem_to_hbm [thread:$0]  (%p5963_p5), %s4720_s3, 128, %s4717_s8, %s4705_s9  }
 0x730 PF: > { %p5609_p13 = scmp.ge.s32.totalorder %s5738_s15, 2  ;;  %s4731_s13 = sand.u32 1, %s5726_s6  }
 0x731   : > { %s4732_s12 = scalar_lea.sflag [#allocation6], %s4731_s13 }
 0x732   : > { %p5606_p0 = pnand %p5609_p13, %p5967_p6 }
 0x734   : > { %p5607_p1 = pneg %p5606_p0 }
 0x736   : > { %5721 = dma.done.wait (%p5607_p1), %s4732_s12, 128  }
 0x737   : > { %5723 = vsyncadd (%p5607_p1), %s4732_s12, 4294967168  ;;  %p72_p2 = scmp.ge.s32.totalorder %s5950_s19, 4   ;;  %s6651_s6 = smov %s5730_s10 }
 0x738   : > { %s6652_s10 = smov %s5734_s11  ;;  %s6653_s11 = smov %s5961_s18 }
 0x739   : > { %s6654_s15 = smov %s5950_s19  ;;  %74 = sbr.rel (!%p72_p2) target bundleno = 57 (0x39), region = 264 }
 0x73e   :  { %4737 = vsyncpa [#allocation6], 1 }
 0x73f   :  { %4739 = vsyncpa [#allocation6 + $0x1], 1 }

</bundles_post_ra>
